<compile_context>
chip_gen: v6e
topology: v6e:2x2x1
jax: 0.10.0
libtpu: 0.0.40
codegen_flags: <defaults>
</compile_context>

<pallas_src>
import functools

import jax
import jax.numpy as jnp
import numpy as np
from jax.experimental import pallas as pl
from jax.experimental.pallas import tpu as pltpu


# -----------------------------------------------------------------------------
# Fused kernel.  One grid step == B_TILE images stacked along rows:
#   input  x   : (B_TILE*32, cin*32)   row = b*32 + r (padded H), lane = ci*32 + u
#   conv1 y1   : (B_TILE*32-4, 6*28)   valid rows b*32 + r, r in 0..27
#   pooled ah  : (B_TILE*32-5, 167)    pool1[b,ci,t,s] at row b*32+2t, lane ci*28+2s
#   conv2 y2   : (B_TILE*32-13, 16*10) valid rows b*32 + 2q', q' in 0..9
#   gather g   : (5*B_TILE, 160)       row q*B_TILE + b = vertically pooled row of q
#   fc4 out    : (B_TILE, 128)         84 real + 44 zero lanes (lane-dense store)
# -----------------------------------------------------------------------------
def _lenet5_kernel(x_ref, r1_ref, b1_ref, r2_ref, b2_ref, sel_ref,
                   w3_ref, b3_ref, w4_ref, b4_ref,
                   o_ref, ah_ref, *, final_relu):
    f32 = jnp.float32
    bf16 = jnp.bfloat16
    rows = x_ref.shape[0]          # B_TILE * 32
    bt = o_ref.shape[1]            # B_TILE
    m1 = rows - 4                  # conv1 output rows (stride-32 per image)
    m2 = rows - 13                 # conv2 output rows (even in-image rows)

    # ---- conv1 + ReLU: 5 accumulating GEMMs, vertical tap i = row offset i ---
    # Horizontal taps / column selection live in the banded RHS r1_ref[i].
    y1 = jnp.dot(x_ref[0:m1, :], r1_ref[0], preferred_element_type=f32)
    for i in range(1, 5):
        y1 = y1 + jnp.dot(x_ref[i:i + m1, :], r1_ref[i],
                          preferred_element_type=f32)
    y1 = jnp.maximum(y1 + b1_ref[...], 0.0)                    # (m1, 168) f32

    # ---- pool1 as two adjacent elementwise maxima (rows, then lanes) --------
    # NOTE: lane pairs across channel boundaries (co*28+27 vs (co+1)*28) and row
    # pairs across image boundaries produce junk entries, but R2's banded rows
    # only read even in-channel columns <= 26 and valid in-image rows, so those
    # entries are never consumed.  Keep this invariant if the layout changes.
    a = jnp.maximum(y1[0:m1 - 1, :], y1[1:m1, :])               # vertical 2-max
    ah = jnp.maximum(a[:, 0:167], a[:, 1:168])                  # horizontal 2-max
    ah_ref[...] = ah.astype(bf16)                               # stage LHS in VMEM

    # ---- conv2 + ReLU: vertical tap i = row offset 2*i on the pooled slab ---
    y2 = jnp.dot(ah_ref[0:m2, :], r2_ref[0], preferred_element_type=f32)
    for i in range(1, 5):
        y2 = y2 + jnp.dot(ah_ref[2 * i:2 * i + m2, :], r2_ref[i],
                          preferred_element_type=f32)
    y2 = jnp.maximum(y2 + b2_ref[...], 0.0)                     # (m2, 160) f32

    # ---- pool2: vertical max (rows m, m+2), gather pool rows via 0/1 matmul,
    #      then horizontal max on the small gathered tensor --------------------
    a2 = jnp.maximum(y2[0:m2 - 2, :], y2[2:m2, :])              # (m2-2, 160)
    g = jnp.dot(sel_ref[...], a2.astype(bf16),
                preferred_element_type=f32)                     # (5*bt, 160)
    gh = jnp.maximum(g[:, 0:159], g[:, 1:160]).astype(bf16)     # (5*bt, 159)

    # ---- fc3 as 5 accumulating (bt, 159)x(159, 120) GEMMs + ReLU ------------
    y3 = b3_ref[...]
    for q in range(5):
        y3 = y3 + jnp.dot(gh[q * bt:(q + 1) * bt, :], w3_ref[q],
                          preferred_element_type=f32)
    y3 = jnp.maximum(y3, 0.0)                                   # (bt, 120)

    # ---- fc4 (padded to 128 output lanes for a lane-dense HBM store) --------
    y4 = jnp.dot(y3.astype(bf16), w4_ref[...],
                 preferred_element_type=f32) + b4_ref[...]      # (bt, 128)
    if final_relu:
        y4 = jnp.maximum(y4, 0.0)
    o_ref[0] = y4.astype(o_ref.dtype)


# -----------------------------------------------------------------------------
# Parameter preparation (outside the kernel, pure XLA, done once per call).
# -----------------------------------------------------------------------------
def _prepare(params, cin, bt, m2):
    bf16 = jnp.bfloat16
    f32 = jnp.float32
    w1 = params["w1"].astype(f32)                    # (5, 5, cin, 6)  HWIO
    w2 = params["w2"].astype(f32)                    # (5, 5, 6, 16)   HWIO

    # conv1 banded RHS: R1[i, ci*32 + u, co*28 + w] = w1[i, u - w, ci, co]
    d1 = np.zeros((5, 32, 28), np.float32)
    for j in range(5):
        d1[j, np.arange(28) + j, np.arange(28)] = 1.0
    r1 = jnp.einsum("ijcd,juw->icudw", w1, jnp.asarray(d1))
    r1 = r1.reshape(5, cin * 32, 6 * 28).astype(bf16)           # (5, cin*32, 168)

    # conv2 banded RHS over the pooled-but-not-downselected slab:
    # R2[i, ci*28 + u, co*10 + w'] = w2[i, j, ci, co]  where u = 2*(w' + j)
    d2 = np.zeros((5, 28, 10), np.float32)
    for j in range(5):
        d2[j, 2 * (np.arange(10) + j), np.arange(10)] = 1.0
    r2 = jnp.einsum("ijcd,juw->icudw", w2, jnp.asarray(d2))
    r2 = r2.reshape(5, 6 * 28, 16 * 10)[:, :167, :].astype(bf16)  # (5, 167, 160)

    b1row = jnp.repeat(params["b1"].astype(f32), 28)[None, :]     # (1, 168)
    b2row = jnp.repeat(params["b2"].astype(f32), 10)[None, :]     # (1, 160)

    # fc3: torch-flatten row order is (c, h, w); split by h, place w at even lanes.
    w3 = params["w3"].astype(f32).reshape(16, 5, 5, 120)          # (c, h, w, 120)
    f3 = np.zeros((5, 10), np.float32)
    f3[np.arange(5), 2 * np.arange(5)] = 1.0
    w3q = jnp.einsum("chpn,pu->hcun", w3, jnp.asarray(f3))
    w3q = w3q.reshape(5, 160, 120)[:, :159, :].astype(bf16)       # (5, 159, 120)

    b3row = params["b3"].astype(f32)[None, :]                     # (1, 120)
    w4p = jnp.pad(params["w4"], ((0, 0), (0, 128 - 84))).astype(bf16)   # (120, 128)
    b4row = jnp.pad(params["b4"], (0, 128 - 84)).astype(f32)[None, :]   # (1, 128)

    # Gather matrix: Sel[q*bt + b, b*32 + 4q] = 1  (picks pool2 row q of image b).
    sel_np = np.zeros((5 * bt, m2 - 2), np.float32)
    for q in range(5):
        sel_np[q * bt + np.arange(bt), 32 * np.arange(bt) + 4 * q] = 1.0
    sel = jnp.asarray(sel_np, dtype=bf16)

    return (r1, b1row, r2, b2row, sel, w3q, b3row, w4p, b4row)


def _pick_tile(b):
    """Batch tile: cap at 16 (conv1 M ~= 508), keep >= 2 grid steps when b >= 2
    so v7x's two TensorCores both get work via dimension_semantics=parallel."""
    if b >= 32:
        return 16
    if b >= 2:
        return (b + 1) // 2
    return 1


# -----------------------------------------------------------------------------
# Public forward (accepts NCHW input, like the PyTorch module).
# -----------------------------------------------------------------------------
@functools.partial(jax.jit, static_argnames=("no_actv",))
def lenet5_forward(params, x_nchw, no_actv=False):
    b, cin, h, w = x_nchw.shape
    assert (h, w) == (28, 28), "LeNet5 head expects 28x28 inputs (fc3 = 16*5*5)"
    bt = _pick_tile(b)
    nt = -(-b // bt)
    bp = nt * bt
    rows = bt * 32
    m1 = rows - 4
    m2 = rows - 13

    consts = _prepare(params, cin, bt, m2)

    # Pad (conv1 padding=2), lay each image out as (32, cin*32) and stack the
    # batch along rows; cast to bf16 (conv LHS is bf16 anyway -> half the DMA).
    xpad = jnp.pad(x_nchw.astype(jnp.float32),
                   ((0, bp - b), (0, 0), (2, 2), (2, 2)))          # (bp, cin, 32, 32)
    x2 = jnp.transpose(xpad, (0, 2, 1, 3)).reshape(bp * 32, cin * 32)
    x2 = x2.astype(jnp.bfloat16)

    kern = functools.partial(_lenet5_kernel, final_relu=not no_actv)

    # FLOPs of the GEMMs the kernel actually issues (padded, counted consistently).
    f_step = 2 * (m1 * (5 * cin * 32) * 168
                  + m2 * (5 * 167) * 160
                  + (5 * bt) * (m2 - 2) * 160
                  + bt * (5 * 159) * 120
                  + bt * 120 * 128)
    bytes_acc = (x2.size * x2.dtype.itemsize + bp * 128 * 4
                 + sum(int(np.prod(c.shape)) * c.dtype.itemsize for c in consts))

    out = pl.pallas_call(
        kern,
        out_shape=jax.ShapeDtypeStruct((nt, bt, 128), jnp.float32),
        grid=(nt,),
        in_specs=[pl.BlockSpec((rows, cin * 32), lambda t: (t, 0))]
                 + [pl.BlockSpec(memory_space=pltpu.MemorySpace.VMEM)] * 9,
        out_specs=pl.BlockSpec((1, bt, 128), lambda t: (t, 0, 0)),
        scratch_shapes=[pltpu.VMEM((m1 - 1, 167), jnp.bfloat16)],
        compiler_params=pltpu.CompilerParams(
            dimension_semantics=("parallel",)),
        cost_estimate=pl.CostEstimate(flops=int(nt * f_step), transcendentals=0,
                                      bytes_accessed=int(bytes_acc)),
    )(x2, *consts)
    return out.reshape(bp, 128)[:b, :84]


# -----------------------------------------------------------------------------
# Deterministic parameter init (PyTorch-like uniform(-1/sqrt(fan_in), ...)).
# w1/w2 are HWIO; w3 is (400, 120) with rows in torch flatten (c, h, w) order.
# -----------------------------------------------------------------------------
def init_params(key, in_channels):
    ks = jax.random.split(key, 8)

    def u(k, shape, fan_in):
        bound = 1.0 / np.sqrt(fan_in)
        return jax.random.uniform(k, shape, jnp.float32, -bound, bound)

    return dict(
        w1=u(ks[0], (5, 5, in_channels, 6), 5 * 5 * in_channels),
        b1=u(ks[1], (6,), 5 * 5 * in_channels),
        w2=u(ks[2], (5, 5, 6, 16), 5 * 5 * 6),
        b2=u(ks[3], (16,), 5 * 5 * 6),
        w3=u(ks[4], (400, 120), 400),
        b3=u(ks[5], (120,), 400),
        w4=u(ks[6], (120, 84), 120),
        b4=u(ks[7], (84,), 120),
    )


# -----------------------------------------------------------------------------
# Pure-JAX f32 reference (for correctness sanity check).
# -----------------------------------------------------------------------------
def lenet5_reference(params, x_nchw, no_actv=False):
    x = jnp.transpose(x_nchw, (0, 2, 3, 1)).astype(jnp.float32)

    def conv(x, w, b, pad):
        y = jax.lax.conv_general_dilated(
            x, w, (1, 1), [(pad, pad), (pad, pad)],
            dimension_numbers=("NHWC", "HWIO", "NHWC"))
        return jax.nn.relu(y + b)

    def pool(x):
        return jax.lax.reduce_window(x, -jnp.inf, jax.lax.max,
                                     (1, 2, 2, 1), (1, 2, 2, 1), "VALID")

    x = pool(conv(x, params["w1"], params["b1"], 2))
    x = pool(conv(x, params["w2"], params["b2"], 0))
    xf = jnp.transpose(x, (0, 3, 1, 2)).reshape(x.shape[0], -1)   # torch flatten
    x = jax.nn.relu(xf @ params["w3"] + params["b3"])
    x = x @ params["w4"] + params["b4"]
    if not no_actv:
        x = jax.nn.relu(x)
    return x


if __name__ == "__main__":
    key = jax.random.PRNGKey(0)
    k1, k2, k3, k4 = jax.random.split(key, 4)

    # Small test: batch=3 (exercises batch padding and 2 grid steps), 1 channel.
    params1 = init_params(k1, 1)
    x1 = jax.random.normal(k2, (3, 1, 28, 28), jnp.float32)
    out1 = jax.block_until_ready(lenet5_forward(params1, x1, no_actv=False))
    assert out1.shape == (3, 84) and out1.dtype == jnp.float32
    ref1 = lenet5_reference(params1, x1, no_actv=False)
    np.testing.assert_allclose(np.asarray(out1), np.asarray(ref1),
                               rtol=3e-2, atol=3e-2)

    # Larger-tile test: batch=37 -> B_TILE=16, 3 grid steps, 3 input channels,
    # and the no_actv=True branch.
    params2 = init_params(k3, 3)
    x2 = jax.random.normal(k4, (37, 3, 28, 28), jnp.float32)
    out2 = jax.block_until_ready(lenet5_forward(params2, x2, no_actv=True))
    assert out2.shape == (37, 84)
    ref2 = lenet5_reference(params2, x2, no_actv=True)
    np.testing.assert_allclose(np.asarray(out2), np.asarray(ref2),
                               rtol=3e-2, atol=3e-2)

    print("KERNEL_OK")
</pallas_src>

<mosaic_0001>
module attributes {stable_mosaic.version = 11 : i64} {
  func.func @_lenet5_kernel(%arg0: i32, %arg1: memref<64x32xbf16, #tpu.memory_space<vmem>>, %arg2: memref<5x32x168xbf16, #tpu.memory_space<vmem>>, %arg3: memref<1x168xf32, #tpu.memory_space<vmem>>, %arg4: memref<5x167x160xbf16, #tpu.memory_space<vmem>>, %arg5: memref<1x160xf32, #tpu.memory_space<vmem>>, %arg6: memref<10x49xbf16, #tpu.memory_space<vmem>>, %arg7: memref<5x159x120xbf16, #tpu.memory_space<vmem>>, %arg8: memref<1x120xf32, #tpu.memory_space<vmem>>, %arg9: memref<120x128xbf16, #tpu.memory_space<vmem>>, %arg10: memref<1x128xf32, #tpu.memory_space<vmem>>, %arg11: memref<1x2x128xf32, #tpu.memory_space<vmem>>, %arg12: memref<59x167xbf16, #tpu.memory_space<vmem>>) attributes {dimension_semantics = [#tpu.dimension_semantics<parallel>], iteration_bounds = array<i64: 2>, scalar_prefetch = 0 : i64, scratch_operands = 1 : i64, tpu.core_type = #tpu.core_type<tc>, window_params = [{transform_indices = @transform_0, window_bounds = array<i64: 64, 32>}, {pipeline_mode = #tpu.pipeline_mode<synchronous>, transform_indices = @transform_1, window_bounds = array<i64: 5, 32, 168>}, {pipeline_mode = #tpu.pipeline_mode<synchronous>, transform_indices = @transform_2, window_bounds = array<i64: 1, 168>}, {pipeline_mode = #tpu.pipeline_mode<synchronous>, transform_indices = @transform_3, window_bounds = array<i64: 5, 167, 160>}, {pipeline_mode = #tpu.pipeline_mode<synchronous>, transform_indices = @transform_4, window_bounds = array<i64: 1, 160>}, {pipeline_mode = #tpu.pipeline_mode<synchronous>, transform_indices = @transform_5, window_bounds = array<i64: 10, 49>}, {pipeline_mode = #tpu.pipeline_mode<synchronous>, transform_indices = @transform_6, window_bounds = array<i64: 5, 159, 120>}, {pipeline_mode = #tpu.pipeline_mode<synchronous>, transform_indices = @transform_7, window_bounds = array<i64: 1, 120>}, {pipeline_mode = #tpu.pipeline_mode<synchronous>, transform_indices = @transform_8, window_bounds = array<i64: 120, 128>}, {pipeline_mode = #tpu.pipeline_mode<synchronous>, transform_indices = @transform_9, window_bounds = array<i64: 1, 128>}, {transform_indices = @transform_10, window_bounds = array<i64: 1, 2, 128>}]} {
    %c0 = arith.constant 0 : index
    %c0_0 = arith.constant 0 : index
    %0 = vector.load %arg1[%c0, %c0_0] : memref<64x32xbf16, #tpu.memory_space<vmem>>, vector<60x32xbf16>
    %c0_1 = arith.constant 0 : index
    %c0_2 = arith.constant 0 : index
    %c0_3 = arith.constant 0 : index
    %1 = vector.load %arg2[%c0_1, %c0_2, %c0_3] : memref<5x32x168xbf16, #tpu.memory_space<vmem>>, vector<1x32x168xbf16>
    %2 = vector.shape_cast %1 : vector<1x32x168xbf16> to vector<32x168xbf16>
    %cst = arith.constant dense<0.000000e+00> : vector<60x168xf32>
    %3 = tpu.matmul %0, %2, %cst {dimension_numbers = #tpu.dot_dimension_numbers<[1], [0], [0], [1], [0, 0, 1, 1], [], []>} : vector<60x32xbf16>, vector<32x168xbf16>, vector<60x168xf32> -> vector<60x168xf32>
    %c1 = arith.constant 1 : index
    %c0_4 = arith.constant 0 : index
    %4 = vector.load %arg1[%c1, %c0_4] : memref<64x32xbf16, #tpu.memory_space<vmem>>, vector<60x32xbf16>
    %c1_5 = arith.constant 1 : index
    %c0_6 = arith.constant 0 : index
    %c0_7 = arith.constant 0 : index
    %5 = vector.load %arg2[%c1_5, %c0_6, %c0_7] : memref<5x32x168xbf16, #tpu.memory_space<vmem>>, vector<1x32x168xbf16>
    %6 = vector.shape_cast %5 : vector<1x32x168xbf16> to vector<32x168xbf16>
    %cst_8 = arith.constant dense<0.000000e+00> : vector<60x168xf32>
    %7 = tpu.matmul %4, %6, %cst_8 {dimension_numbers = #tpu.dot_dimension_numbers<[1], [0], [0], [1], [0, 0, 1, 1], [], []>} : vector<60x32xbf16>, vector<32x168xbf16>, vector<60x168xf32> -> vector<60x168xf32>
    %8 = arith.addf %3, %7 : vector<60x168xf32>
    %c2 = arith.constant 2 : index
    %c0_9 = arith.constant 0 : index
    %9 = vector.load %arg1[%c2, %c0_9] : memref<64x32xbf16, #tpu.memory_space<vmem>>, vector<60x32xbf16>
    %c2_10 = arith.constant 2 : index
    %c0_11 = arith.constant 0 : index
    %c0_12 = arith.constant 0 : index
    %10 = vector.load %arg2[%c2_10, %c0_11, %c0_12] : memref<5x32x168xbf16, #tpu.memory_space<vmem>>, vector<1x32x168xbf16>
    %11 = vector.shape_cast %10 : vector<1x32x168xbf16> to vector<32x168xbf16>
    %cst_13 = arith.constant dense<0.000000e+00> : vector<60x168xf32>
    %12 = tpu.matmul %9, %11, %cst_13 {dimension_numbers = #tpu.dot_dimension_numbers<[1], [0], [0], [1], [0, 0, 1, 1], [], []>} : vector<60x32xbf16>, vector<32x168xbf16>, vector<60x168xf32> -> vector<60x168xf32>
    %13 = arith.addf %8, %12 : vector<60x168xf32>
    %c3 = arith.constant 3 : index
    %c0_14 = arith.constant 0 : index
    %14 = vector.load %arg1[%c3, %c0_14] : memref<64x32xbf16, #tpu.memory_space<vmem>>, vector<60x32xbf16>
    %c3_15 = arith.constant 3 : index
    %c0_16 = arith.constant 0 : index
    %c0_17 = arith.constant 0 : index
    %15 = vector.load %arg2[%c3_15, %c0_16, %c0_17] : memref<5x32x168xbf16, #tpu.memory_space<vmem>>, vector<1x32x168xbf16>
    %16 = vector.shape_cast %15 : vector<1x32x168xbf16> to vector<32x168xbf16>
    %cst_18 = arith.constant dense<0.000000e+00> : vector<60x168xf32>
    %17 = tpu.matmul %14, %16, %cst_18 {dimension_numbers = #tpu.dot_dimension_numbers<[1], [0], [0], [1], [0, 0, 1, 1], [], []>} : vector<60x32xbf16>, vector<32x168xbf16>, vector<60x168xf32> -> vector<60x168xf32>
    %18 = arith.addf %13, %17 : vector<60x168xf32>
    %c4 = arith.constant 4 : index
    %c0_19 = arith.constant 0 : index
    %19 = vector.load %arg1[%c4, %c0_19] : memref<64x32xbf16, #tpu.memory_space<vmem>>, vector<60x32xbf16>
    %c4_20 = arith.constant 4 : index
    %c0_21 = arith.constant 0 : index
    %c0_22 = arith.constant 0 : index
    %20 = vector.load %arg2[%c4_20, %c0_21, %c0_22] : memref<5x32x168xbf16, #tpu.memory_space<vmem>>, vector<1x32x168xbf16>
    %21 = vector.shape_cast %20 : vector<1x32x168xbf16> to vector<32x168xbf16>
    %cst_23 = arith.constant dense<0.000000e+00> : vector<60x168xf32>
    %22 = tpu.matmul %19, %21, %cst_23 {dimension_numbers = #tpu.dot_dimension_numbers<[1], [0], [0], [1], [0, 0, 1, 1], [], []>} : vector<60x32xbf16>, vector<32x168xbf16>, vector<60x168xf32> -> vector<60x168xf32>
    %23 = arith.addf %18, %22 : vector<60x168xf32>
    %c0_24 = arith.constant 0 : index
    %c0_25 = arith.constant 0 : index
    %24 = vector.load %arg3[%c0_24, %c0_25] : memref<1x168xf32, #tpu.memory_space<vmem>>, vector<1x168xf32>
    %25 = vector.broadcast %24 : vector<1x168xf32> to vector<60x168xf32>
    %26 = arith.addf %23, %25 : vector<60x168xf32>
    %cst_26 = arith.constant 0.000000e+00 : f32
    %27 = vector.broadcast %cst_26 : f32 to vector<60x168xf32>
    %28 = arith.maximumf %26, %27 : vector<60x168xf32>
    %29 = vector.extract_strided_slice %28 {offsets = [0, 0], sizes = [59, 168], strides = [1, 1]} : vector<60x168xf32> to vector<59x168xf32>
    %30 = vector.extract_strided_slice %28 {offsets = [1, 0], sizes = [59, 168], strides = [1, 1]} : vector<60x168xf32> to vector<59x168xf32>
    %31 = arith.maximumf %29, %30 : vector<59x168xf32>
    %32 = vector.extract_strided_slice %31 {offsets = [0, 0], sizes = [59, 167], strides = [1, 1]} : vector<59x168xf32> to vector<59x167xf32>
    %33 = vector.extract_strided_slice %31 {offsets = [0, 1], sizes = [59, 167], strides = [1, 1]} : vector<59x168xf32> to vector<59x167xf32>
    %34 = arith.maximumf %32, %33 : vector<59x167xf32>
    %35 = arith.truncf %34 : vector<59x167xf32> to vector<59x167xbf16>
    %c0_27 = arith.constant 0 : index
    %c0_28 = arith.constant 0 : index
    %36 = vector.load %arg12[%c0_27, %c0_28] : memref<59x167xbf16, #tpu.memory_space<vmem>>, vector<59x167xbf16>
    tpu.vector_store %arg12[%c0_27, %c0_28], %35 {strides = array<i32>} : memref<59x167xbf16, #tpu.memory_space<vmem>>, vector<59x167xbf16>,
    %c0_29 = arith.constant 0 : index
    %c0_30 = arith.constant 0 : index
    %37 = vector.load %arg12[%c0_29, %c0_30] : memref<59x167xbf16, #tpu.memory_space<vmem>>, vector<51x167xbf16>
    %c0_31 = arith.constant 0 : index
    %c0_32 = arith.constant 0 : index
    %c0_33 = arith.constant 0 : index
    %38 = vector.load %arg4[%c0_31, %c0_32, %c0_33] : memref<5x167x160xbf16, #tpu.memory_space<vmem>>, vector<1x167x160xbf16>
    %39 = vector.shape_cast %38 : vector<1x167x160xbf16> to vector<167x160xbf16>
    %cst_34 = arith.constant dense<0.000000e+00> : vector<51x160xf32>
    %40 = tpu.matmul %37, %39, %cst_34 {dimension_numbers = #tpu.dot_dimension_numbers<[1], [0], [0], [1], [0, 0, 1, 1], [], []>} : vector<51x167xbf16>, vector<167x160xbf16>, vector<51x160xf32> -> vector<51x160xf32>
    %c2_35 = arith.constant 2 : index
    %c0_36 = arith.constant 0 : index
    %41 = vector.load %arg12[%c2_35, %c0_36] : memref<59x167xbf16, #tpu.memory_space<vmem>>, vector<51x167xbf16>
    %c1_37 = arith.constant 1 : index
    %c0_38 = arith.constant 0 : index
    %c0_39 = arith.constant 0 : index
    %42 = vector.load %arg4[%c1_37, %c0_38, %c0_39] : memref<5x167x160xbf16, #tpu.memory_space<vmem>>, vector<1x167x160xbf16>
    %43 = vector.shape_cast %42 : vector<1x167x160xbf16> to vector<167x160xbf16>
    %cst_40 = arith.constant dense<0.000000e+00> : vector<51x160xf32>
    %44 = tpu.matmul %41, %43, %cst_40 {dimension_numbers = #tpu.dot_dimension_numbers<[1], [0], [0], [1], [0, 0, 1, 1], [], []>} : vector<51x167xbf16>, vector<167x160xbf16>, vector<51x160xf32> -> vector<51x160xf32>
    %45 = arith.addf %40, %44 : vector<51x160xf32>
    %c4_41 = arith.constant 4 : index
    %c0_42 = arith.constant 0 : index
    %46 = vector.load %arg12[%c4_41, %c0_42] : memref<59x167xbf16, #tpu.memory_space<vmem>>, vector<51x167xbf16>
    %c2_43 = arith.constant 2 : index
    %c0_44 = arith.constant 0 : index
    %c0_45 = arith.constant 0 : index
    %47 = vector.load %arg4[%c2_43, %c0_44, %c0_45] : memref<5x167x160xbf16, #tpu.memory_space<vmem>>, vector<1x167x160xbf16>
    %48 = vector.shape_cast %47 : vector<1x167x160xbf16> to vector<167x160xbf16>
    %cst_46 = arith.constant dense<0.000000e+00> : vector<51x160xf32>
    %49 = tpu.matmul %46, %48, %cst_46 {dimension_numbers = #tpu.dot_dimension_numbers<[1], [0], [0], [1], [0, 0, 1, 1], [], []>} : vector<51x167xbf16>, vector<167x160xbf16>, vector<51x160xf32> -> vector<51x160xf32>
    %50 = arith.addf %45, %49 : vector<51x160xf32>
    %c6 = arith.constant 6 : index
    %c0_47 = arith.constant 0 : index
    %51 = vector.load %arg12[%c6, %c0_47] : memref<59x167xbf16, #tpu.memory_space<vmem>>, vector<51x167xbf16>
    %c3_48 = arith.constant 3 : index
    %c0_49 = arith.constant 0 : index
    %c0_50 = arith.constant 0 : index
    %52 = vector.load %arg4[%c3_48, %c0_49, %c0_50] : memref<5x167x160xbf16, #tpu.memory_space<vmem>>, vector<1x167x160xbf16>
    %53 = vector.shape_cast %52 : vector<1x167x160xbf16> to vector<167x160xbf16>
    %cst_51 = arith.constant dense<0.000000e+00> : vector<51x160xf32>
    %54 = tpu.matmul %51, %53, %cst_51 {dimension_numbers = #tpu.dot_dimension_numbers<[1], [0], [0], [1], [0, 0, 1, 1], [], []>} : vector<51x167xbf16>, vector<167x160xbf16>, vector<51x160xf32> -> vector<51x160xf32>
    %55 = arith.addf %50, %54 : vector<51x160xf32>
    %c8 = arith.constant 8 : index
    %c0_52 = arith.constant 0 : index
    %56 = vector.load %arg12[%c8, %c0_52] : memref<59x167xbf16, #tpu.memory_space<vmem>>, vector<51x167xbf16>
    %c4_53 = arith.constant 4 : index
    %c0_54 = arith.constant 0 : index
    %c0_55 = arith.constant 0 : index
    %57 = vector.load %arg4[%c4_53, %c0_54, %c0_55] : memref<5x167x160xbf16, #tpu.memory_space<vmem>>, vector<1x167x160xbf16>
    %58 = vector.shape_cast %57 : vector<1x167x160xbf16> to vector<167x160xbf16>
    %cst_56 = arith.constant dense<0.000000e+00> : vector<51x160xf32>
    %59 = tpu.matmul %56, %58, %cst_56 {dimension_numbers = #tpu.dot_dimension_numbers<[1], [0], [0], [1], [0, 0, 1, 1], [], []>} : vector<51x167xbf16>, vector<167x160xbf16>, vector<51x160xf32> -> vector<51x160xf32>
    %60 = arith.addf %55, %59 : vector<51x160xf32>
    %c0_57 = arith.constant 0 : index
    %c0_58 = arith.constant 0 : index
    %61 = vector.load %arg5[%c0_57, %c0_58] : memref<1x160xf32, #tpu.memory_space<vmem>>, vector<1x160xf32>
    %62 = vector.broadcast %61 : vector<1x160xf32> to vector<51x160xf32>
    %63 = arith.addf %60, %62 : vector<51x160xf32>
    %cst_59 = arith.constant 0.000000e+00 : f32
    %64 = vector.broadcast %cst_59 : f32 to vector<51x160xf32>
    %65 = arith.maximumf %63, %64 : vector<51x160xf32>
    %66 = vector.extract_strided_slice %65 {offsets = [0, 0], sizes = [49, 160], strides = [1, 1]} : vector<51x160xf32> to vector<49x160xf32>
    %67 = vector.extract_strided_slice %65 {offsets = [2, 0], sizes = [49, 160], strides = [1, 1]} : vector<51x160xf32> to vector<49x160xf32>
    %68 = arith.maximumf %66, %67 : vector<49x160xf32>
    %c0_60 = arith.constant 0 : index
    %c0_61 = arith.constant 0 : index
    %69 = vector.load %arg6[%c0_60, %c0_61] : memref<10x49xbf16, #tpu.memory_space<vmem>>, vector<10x49xbf16>
    %70 = arith.truncf %68 : vector<49x160xf32> to vector<49x160xbf16>
    %cst_62 = arith.constant dense<0.000000e+00> : vector<10x160xf32>
    %71 = tpu.matmul %69, %70, %cst_62 {dimension_numbers = #tpu.dot_dimension_numbers<[1], [0], [0], [1], [0, 0, 1, 1], [], []>} : vector<10x49xbf16>, vector<49x160xbf16>, vector<10x160xf32> -> vector<10x160xf32>
    %72 = vector.extract_strided_slice %71 {offsets = [0, 0], sizes = [10, 159], strides = [1, 1]} : vector<10x160xf32> to vector<10x159xf32>
    %73 = vector.extract_strided_slice %71 {offsets = [0, 1], sizes = [10, 159], strides = [1, 1]} : vector<10x160xf32> to vector<10x159xf32>
    %74 = arith.maximumf %72, %73 : vector<10x159xf32>
    %75 = arith.truncf %74 : vector<10x159xf32> to vector<10x159xbf16>
    %c0_63 = arith.constant 0 : index
    %c0_64 = arith.constant 0 : index
    %76 = vector.load %arg8[%c0_63, %c0_64] : memref<1x120xf32, #tpu.memory_space<vmem>>, vector<1x120xf32>
    %77 = vector.extract_strided_slice %75 {offsets = [0, 0], sizes = [2, 159], strides = [1, 1]} : vector<10x159xbf16> to vector<2x159xbf16>
    %c0_65 = arith.constant 0 : index
    %c0_66 = arith.constant 0 : index
    %c0_67 = arith.constant 0 : index
    %78 = vector.load %arg7[%c0_65, %c0_66, %c0_67] : memref<5x159x120xbf16, #tpu.memory_space<vmem>>, vector<1x159x120xbf16>
    %79 = vector.shape_cast %78 : vector<1x159x120xbf16> to vector<159x120xbf16>
    %cst_68 = arith.constant dense<0.000000e+00> : vector<2x120xf32>
    %80 = tpu.matmul %77, %79, %cst_68 {dimension_numbers = #tpu.dot_dimension_numbers<[1], [0], [0], [1], [0, 0, 1, 1], [], []>} : vector<2x159xbf16>, vector<159x120xbf16>, vector<2x120xf32> -> vector<2x120xf32>
    %81 = vector.broadcast %76 : vector<1x120xf32> to vector<2x120xf32>
    %82 = arith.addf %81, %80 : vector<2x120xf32>
    %83 = vector.extract_strided_slice %75 {offsets = [2, 0], sizes = [2, 159], strides = [1, 1]} : vector<10x159xbf16> to vector<2x159xbf16>
    %c1_69 = arith.constant 1 : index
    %c0_70 = arith.constant 0 : index
    %c0_71 = arith.constant 0 : index
    %84 = vector.load %arg7[%c1_69, %c0_70, %c0_71] : memref<5x159x120xbf16, #tpu.memory_space<vmem>>, vector<1x159x120xbf16>
    %85 = vector.shape_cast %84 : vector<1x159x120xbf16> to vector<159x120xbf16>
    %cst_72 = arith.constant dense<0.000000e+00> : vector<2x120xf32>
    %86 = tpu.matmul %83, %85, %cst_72 {dimension_numbers = #tpu.dot_dimension_numbers<[1], [0], [0], [1], [0, 0, 1, 1], [], []>} : vector<2x159xbf16>, vector<159x120xbf16>, vector<2x120xf32> -> vector<2x120xf32>
    %87 = arith.addf %82, %86 : vector<2x120xf32>
    %88 = vector.extract_strided_slice %75 {offsets = [4, 0], sizes = [2, 159], strides = [1, 1]} : vector<10x159xbf16> to vector<2x159xbf16>
    %c2_73 = arith.constant 2 : index
    %c0_74 = arith.constant 0 : index
    %c0_75 = arith.constant 0 : index
    %89 = vector.load %arg7[%c2_73, %c0_74, %c0_75] : memref<5x159x120xbf16, #tpu.memory_space<vmem>>, vector<1x159x120xbf16>
    %90 = vector.shape_cast %89 : vector<1x159x120xbf16> to vector<159x120xbf16>
    %cst_76 = arith.constant dense<0.000000e+00> : vector<2x120xf32>
    %91 = tpu.matmul %88, %90, %cst_76 {dimension_numbers = #tpu.dot_dimension_numbers<[1], [0], [0], [1], [0, 0, 1, 1], [], []>} : vector<2x159xbf16>, vector<159x120xbf16>, vector<2x120xf32> -> vector<2x120xf32>
    %92 = arith.addf %87, %91 : vector<2x120xf32>
    %93 = vector.extract_strided_slice %75 {offsets = [6, 0], sizes = [2, 159], strides = [1, 1]} : vector<10x159xbf16> to vector<2x159xbf16>
    %c3_77 = arith.constant 3 : index
    %c0_78 = arith.constant 0 : index
    %c0_79 = arith.constant 0 : index
    %94 = vector.load %arg7[%c3_77, %c0_78, %c0_79] : memref<5x159x120xbf16, #tpu.memory_space<vmem>>, vector<1x159x120xbf16>
    %95 = vector.shape_cast %94 : vector<1x159x120xbf16> to vector<159x120xbf16>
    %cst_80 = arith.constant dense<0.000000e+00> : vector<2x120xf32>
    %96 = tpu.matmul %93, %95, %cst_80 {dimension_numbers = #tpu.dot_dimension_numbers<[1], [0], [0], [1], [0, 0, 1, 1], [], []>} : vector<2x159xbf16>, vector<159x120xbf16>, vector<2x120xf32> -> vector<2x120xf32>
    %97 = arith.addf %92, %96 : vector<2x120xf32>
    %98 = vector.extract_strided_slice %75 {offsets = [8, 0], sizes = [2, 159], strides = [1, 1]} : vector<10x159xbf16> to vector<2x159xbf16>
    %c4_81 = arith.constant 4 : index
    %c0_82 = arith.constant 0 : index
    %c0_83 = arith.constant 0 : index
    %99 = vector.load %arg7[%c4_81, %c0_82, %c0_83] : memref<5x159x120xbf16, #tpu.memory_space<vmem>>, vector<1x159x120xbf16>
    %100 = vector.shape_cast %99 : vector<1x159x120xbf16> to vector<159x120xbf16>
    %cst_84 = arith.constant dense<0.000000e+00> : vector<2x120xf32>
    %101 = tpu.matmul %98, %100, %cst_84 {dimension_numbers = #tpu.dot_dimension_numbers<[1], [0], [0], [1], [0, 0, 1, 1], [], []>} : vector<2x159xbf16>, vector<159x120xbf16>, vector<2x120xf32> -> vector<2x120xf32>
    %102 = arith.addf %97, %101 : vector<2x120xf32>
    %cst_85 = arith.constant 0.000000e+00 : f32
    %103 = vector.broadcast %cst_85 : f32 to vector<2x120xf32>
    %104 = arith.maximumf %102, %103 : vector<2x120xf32>
    %105 = arith.truncf %104 : vector<2x120xf32> to vector<2x120xbf16>
    %c0_86 = arith.constant 0 : index
    %c0_87 = arith.constant 0 : index
    %106 = vector.load %arg9[%c0_86, %c0_87] : memref<120x128xbf16, #tpu.memory_space<vmem>>, vector<120x128xbf16>
    %cst_88 = arith.constant dense<0.000000e+00> : vector<2x128xf32>
    %107 = tpu.matmul %105, %106, %cst_88 {dimension_numbers = #tpu.dot_dimension_numbers<[1], [0], [0], [1], [0, 0, 1, 1], [], []>} : vector<2x120xbf16>, vector<120x128xbf16>, vector<2x128xf32> -> vector<2x128xf32>
    %c0_89 = arith.constant 0 : index
    %c0_90 = arith.constant 0 : index
    %108 = vector.load %arg10[%c0_89, %c0_90] : memref<1x128xf32, #tpu.memory_space<vmem>>, vector<1x128xf32>
    %109 = vector.broadcast %108 : vector<1x128xf32> to vector<2x128xf32>
    %110 = arith.addf %107, %109 : vector<2x128xf32>
    %cst_91 = arith.constant 0.000000e+00 : f32
    %111 = vector.broadcast %cst_91 : f32 to vector<2x128xf32>
    %112 = arith.maximumf %110, %111 : vector<2x128xf32>
    %c0_92 = arith.constant 0 : index
    %c0_93 = arith.constant 0 : index
    %c0_94 = arith.constant 0 : index
    %113 = vector.load %arg11[%c0_92, %c0_93, %c0_94] : memref<1x2x128xf32, #tpu.memory_space<vmem>>, vector<1x2x128xf32>
    %114 = vector.shape_cast %113 : vector<1x2x128xf32> to vector<2x128xf32>
    %115 = vector.shape_cast %112 : vector<2x128xf32> to vector<1x2x128xf32>
    tpu.vector_store %arg11[%c0_92, %c0_93, %c0_94], %115 {strides = array<i32>} : memref<1x2x128xf32, #tpu.memory_space<vmem>>, vector<1x2x128xf32>,
    return
  }
  func.func @transform_0(%arg0: i32) -> (i32, i32) {
    %c0_i32 = arith.constant 0 : i32
    %c0_i32_0 = arith.constant 0 : i32
    return %arg0, %c0_i32 : i32, i32
  }
  func.func @transform_1(%arg0: i32) -> (i32, i32, i32) {
    %c0_i32 = arith.constant 0 : i32
    %c0_i32_0 = arith.constant 0 : i32
    %c0_i32_1 = arith.constant 0 : i32
    %c0_i32_2 = arith.constant 0 : i32
    return %c0_i32, %c0_i32_0, %c0_i32_1 : i32, i32, i32
  }
  func.func @transform_2(%arg0: i32) -> (i32, i32) {
    %c0_i32 = arith.constant 0 : i32
    %c0_i32_0 = arith.constant 0 : i32
    %c0_i32_1 = arith.constant 0 : i32
    return %c0_i32, %c0_i32_0 : i32, i32
  }
  func.func @transform_3(%arg0: i32) -> (i32, i32, i32) {
    %c0_i32 = arith.constant 0 : i32
    %c0_i32_0 = arith.constant 0 : i32
    %c0_i32_1 = arith.constant 0 : i32
    %c0_i32_2 = arith.constant 0 : i32
    return %c0_i32, %c0_i32_0, %c0_i32_1 : i32, i32, i32
  }
  func.func @transform_4(%arg0: i32) -> (i32, i32) {
    %c0_i32 = arith.constant 0 : i32
    %c0_i32_0 = arith.constant 0 : i32
    %c0_i32_1 = arith.constant 0 : i32
    return %c0_i32, %c0_i32_0 : i32, i32
  }
  func.func @transform_5(%arg0: i32) -> (i32, i32) {
    %c0_i32 = arith.constant 0 : i32
    %c0_i32_0 = arith.constant 0 : i32
    %c0_i32_1 = arith.constant 0 : i32
    return %c0_i32, %c0_i32_0 : i32, i32
  }
  func.func @transform_6(%arg0: i32) -> (i32, i32, i32) {
    %c0_i32 = arith.constant 0 : i32
    %c0_i32_0 = arith.constant 0 : i32
    %c0_i32_1 = arith.constant 0 : i32
    %c0_i32_2 = arith.constant 0 : i32
    return %c0_i32, %c0_i32_0, %c0_i32_1 : i32, i32, i32
  }
  func.func @transform_7(%arg0: i32) -> (i32, i32) {
    %c0_i32 = arith.constant 0 : i32
    %c0_i32_0 = arith.constant 0 : i32
    %c0_i32_1 = arith.constant 0 : i32
    return %c0_i32, %c0_i32_0 : i32, i32
  }
  func.func @transform_8(%arg0: i32) -> (i32, i32) {
    %c0_i32 = arith.constant 0 : i32
    %c0_i32_0 = arith.constant 0 : i32
    %c0_i32_1 = arith.constant 0 : i32
    return %c0_i32, %c0_i32_0 : i32, i32
  }
  func.func @transform_9(%arg0: i32) -> (i32, i32) {
    %c0_i32 = arith.constant 0 : i32
    %c0_i32_0 = arith.constant 0 : i32
    %c0_i32_1 = arith.constant 0 : i32
    return %c0_i32, %c0_i32_0 : i32, i32
  }
  func.func @transform_10(%arg0: i32) -> (i32, i32, i32) {
    %c0_i32 = arith.constant 0 : i32
    %c0_i32_0 = arith.constant 0 : i32
    %c0_i32_1 = arith.constant 0 : i32
    return %arg0, %c0_i32, %c0_i32_0 : i32, i32, i32
  }
}

</mosaic_0001>

<bundles_post_ra>
// kernel: lenet5_forward.1
= control target key start
LH: loop header
LB: loop body
LE: loop exit
PB: predicated region body
PF: predicated region fallthrough
CT: control target
= control target key end

     0   :  { %15 = vsyncpa [#allocation4], 0  ;;  %s6146_s0 = inlined_call_operand.vmem [shape: bf16[128,32], index: 0, kind: input, shape index: {}]   ;;  %s6147_s1 = inlined_call_operand.vmem [shape: bf16[5,32,168], index: 1, kind: input, shape index: {}]   ;;  %s6148_s2 = inlined_call_operand.vmem [shape: f32[1,168], index: 2, kind: input, shape index: {}]   ;;  %s6149_s3 = inlined_call_operand.vmem [shape: bf16[5,167,160], index: 3, kind: input, shape index: {}]   ;;  %s6150_s4 = inlined_call_operand.vmem [shape: f32[1,160], index: 4, kind: input, shape index: {}]   ;;  %s6151_s5 = inlined_call_operand.vmem [shape: bf16[10,49], index: 5, kind: input, shape index: {}]   ;;  %s6152_s6 = inlined_call_operand.vmem [shape: bf16[5,159,120], index: 6, kind: input, shape index: {}]   ;;  %s6153_s7 = inlined_call_operand.vmem [shape: f32[1,120], index: 7, kind: input, shape index: {}]   ;;  %s6154_s8 = inlined_call_operand.vmem [shape: bf16[120,128], index: 8, kind: input, shape index: {}]   ;;  %s6155_s9 = inlined_call_operand.vmem [shape: f32[1,128], index: 9, kind: input, shape index: {}]   ;;  %s6156_s10 = inlined_call_operand.hbm [shape: f32[2,2,128], index: 10, kind: output, shape index: {}]  }
   0x1   :  { %17 = vsyncpa [#allocation4 + $0x1], 0  ;;  %s4716_s13 = smov 0   ;;  %s4718_s14 = smov 0  }
   0x2   :  { %s4720_s15 = smov 0   ;;  %s4722_s16 = smov 0  }
   0x3 LB: > { %6164 = sst [smem:[#allocation6_spill]] %s4649_s15  ;;  %s4737_s17 = sadd.s32 4294967295, %s4653_s16   ;;  %s4653_s16 = sphi %s4722_s16, %s6189_s16   ;;  %s4649_s15 = sphi %s4720_s15, %s6186_s15   ;;  %s4645_s14 = sphi %s4718_s14, %s6188_s14   ;;  %s4641_s13 = sphi %s4716_s13, %s6187_s13  }
   0x4   : > { %s3708_s18 = sadd.s32 4294967294, %s4653_s16   ;;  %s4741_s19 = sadd.s32 1, %s4653_s16  }
   0x5   : > { %s245_s20 = sadd.s32 1, %s4649_s15  ;;  %s242_s21 = ssub.s32 %s4653_s16, %s4741_s19 }
   0x6   : > { %p255_p0 = scmp.ne.s32.totalorder %s4649_s15, %s4645_s14  ;;  %p243_p1 = scmp.eq.s32.totalorder %s242_s21, 0 }
   0x7   : > { %p256_p2 = scmp.eq.s32.totalorder %s4737_s17, 1  ;;  %p261_p3 = scmp.ne.s32.totalorder %s4645_s14, %s4641_s13 }
   0x8   : > { %p262_p4 = scmp.eq.s32.totalorder %s3708_s18, 1  ;;  %p3711_p7 = scmp.ge.s32.totalorder %s4653_s16, 1 }
   0x9   : > { %s4752_s22 = scalar_select %p243_p1, %s4649_s15, %s245_s20  }
   0xa   : > { %p4754_p5 = por %p256_p2, %p255_p0  ;;  %p4758_p6 = por %p262_p4, %p261_p3 }
   0xb   : > { %6165 = sst [smem:[#allocation7_spill]] %s4752_s22  ;;  %p316_p8 = scmp.lt.s32.totalorder %s4653_s16, 3 }
   0xd   : > { %p317_p9 = pnand %p3711_p7, %p316_p8 }
   0xf   : > { %320 = sbr.rel (%p317_p9) target bundleno = 1612 (0x64c), region = 60 }
  0x14   : > { %v4316_v0 = vld [vmem:[%s6147_s1 + $0x34] ss:$8 sps:$4 sm:$0xff]   ;;  %s3713_s27 = sshll.u32 %s4737_s17, 3  ;;  %v6158_v2 = vmov 0   ;;  %v4320_v3 = vld [vmem:[%s6147_s1 + $0x30] ss:$8 sps:$4 sm:$0xff]  }
  0x15   : > { %v4318_v1 = vld [vmem:[%s6147_s1 + $0x14] ss:$8 sps:$4 sm:$0xff]   ;;  %496 = vmatprep.mubr.bf16.mxu0 %v6158_v2  ;;  %601 = vmatprep.mubr.bf16.mxu1 %v6158_v2  ;;  %p355_p10 = scmp.lt.s32.totalorder %s3713_s27, 15  ;;  %v4321_v4 = vld [vmem:[%s6147_s1 + $0x10] ss:$8 sps:$4 sm:$0xff]   ;;  %vm451_vm0 = vcmask 261120  }
  0x16   : > { %476 = vmatprep.subr.bf16.mxu0 %v4316_v0  ;;  %581 = vmatprep.subr.bf16.mxu1 %v4318_v1  ;;  %v4322_v5 = vld [vmem:[%s6147_s1 + $0x24] ss:$8 sps:$4 sm:$0xff]   ;;  %v4326_v7 = vld [vmem:[%s6147_s1 + $0x20] ss:$8 sps:$4 sm:$0xff]   ;;  %v4334_v9 = vld [vmem:[%s6147_s1 + $0x54] ss:$8 sps:$4 sm:$0xff]  }
  0x17   : > { %s6191_s27 = smov (!%p355_p10, %s3713_s27), 15  ;;  %477 = vmatpush1.bf16.msra.mxu0 %v4320_v3  ;;  %582 = vmatpush1.bf16.msra.mxu1 %v4321_v4  ;;  %v4324_v6 = vld [vmem:[%s6147_s1 + $0x4] ss:$8 sps:$4 sm:$0xff]   ;;  %v4327_v8 = vld [vmem:[%s6147_s1] ss:$8 sps:$4 sm:$0xff]   ;;  %vm945_vm2 = vcmask 1045504  }
  0x18   : > { %478 = vmatprep.subr.bf16.mxu0 %v4322_v5  ;;  %s3714_s12 = sshll.u32 %s6191_s27, 2  ;;  %583 = vmatprep.subr.bf16.mxu1 %v4324_v6  ;;  %vm399_vm1 = vsmask.f32 7424  ;;  %v4332_v20 = vld [vmem:[%s6147_s1 + $0x50] ss:$8 sps:$4 sm:$0xff]   ;;  %vm651_vm4 = vcmask 1046528  }
  0x19   : > { %s4794_s21 = scalar_lea.vmem %s6146_s0, %s3714_s12  ;;  %v4336_v21 = vld [vmem:[%s6147_s1 + $0x70] ss:$8 sps:$4 sm:$0xff]   ;;  %v4338_v23 = vld [vmem:[%s6147_s1 + $0x74] ss:$8 sps:$4 sm:$0xff]   ;;  %v4341_v28 = vld [vmem:[%s6147_s1 + $0x44] ss:$8 sps:$4 sm:$0xff]  }
  0x1a   : > { %v361_v10 = vld [vmem:[%s4794_s21] sm:$0xf]  ;;  %v362_v11 = vld [vmem:[%s4794_s21 + $0x4] sm:$0xf]  ;;  %v4802_v13 = vld [vmem:[%s4794_s21 + $0x8] sm:$0xff]   ;;  %vm1571_vm5 = vcmask 1042432  }
  0x1b   : > { %479 = vmatpush1.bf16.msra.mxu0 %v4326_v7  ;;  %584 = vmatpush1.bf16.msra.mxu1 %v4327_v8  ;;  %v3719_v12 = vcombine.low %v361_v10, %v362_v11  ;;  %v408_v16 = vshll.u32 %v4802_v13, 16  ;;  %v4806_v17 = vld [vmem:[%s4794_s21 + $0x10] sm:$0xff]   ;;  %v4817_v22 = vld [vmem:[%s4794_s21 + $0x18] sm:$0xf]  ;;  %v412_v25 = vshrl.u32 %v4802_v13, 16  ;;  %v947_v43 = vrot.slane %v4802_v13, 2 }
  0x1c   : > { %703 = vmatprep.subr.bf16.mxu0 %v4334_v9  ;;  %v416_v26 = vshll.u32 %v4806_v17, 16  ;;  %v373_v27 = vld [vmem:[%s4794_s21 + $0x1c] sm:$0x7]  ;;  %859 = vmatprep.subr.bf16.mxu1 %v4338_v23  ;;  %v4344_v30 = vld [vmem:[%s6147_s1 + $0x64] ss:$8 sps:$4 sm:$0xff]   ;;  %v420_v41 = vshrl.u32 %v4806_v17, 16 }
  0x1d   : > { %v401_v14 = vshrl.u32 %v3719_v12, 16  ;;  %v403_v15 = vshll.u32 %v3719_v12, 16  ;;  %v410_v19 = vrot.slane %v408_v16, 1  ;;  %v4342_v31 = vld [vmem:[%s6147_s1 + $0x60] ss:$8 sps:$4 sm:$0xff]   ;;  %v4840_v34 = vcombine.low %v4817_v22, %v373_v27  ;;  %s4657_s15 = smov 127  }
  0x1e   : > { %3736 = vmatmul.mubr.msk.bf16.vlgmr.msra.gmra.mxu1 %vm451_vm0, %v3719_v12  ;;  %v418_v33 = vrot.slane %v416_v26, 1  ;;  %v4339_v35 = vld [vmem:[%s6147_s1 + $0x40] ss:$8 sps:$4 sm:$0xff]   ;;  %v4348_v36 = vld [vmem:[%s6147_s1 + $0x94] ss:$8 sps:$4 sm:$0xff]   ;;  %v949_v45 = vrot.slane %v4806_v17, 2 }
  0x1f   : > { %v405_v18 = vrot.slane %v403_v15, 1  ;;  %611 = vmatprep.mubr.bf16.mxu1 %v6158_v2  ;;  %860 = vmatpush1.bf16.msra.mxu1 %v4336_v21  ;;  %v414_v32 = vor.u32 %v412_v25, %v410_v19  ;;  %v642_v37 = vld [vmem:[%s4794_s21] sm:$0xe]  ;;  %v424_v42 = vshll.u32 %v4840_v34, 16  ;;  %v368_v51 = vld [vmem:[%s4794_s21 + $0x1c] sm:$0x3] }
  0x20   : > { %861 = vmatprep.subr.bf16.mxu1 %v4344_v30  ;;  %v936_v38 = vld [vmem:[%s4794_s21] sm:$0xc]  ;;  %v3744_v46 = vcombine.low %v642_v37, %v362_v11  ;;  %v4865_v48 = vsel %vm945_vm2, %v947_v43, %v949_v45  ;;  %v422_v49 = vor.u32 %v420_v41, %v418_v33  ;;  %v799_v55 = vrot.slane %v408_v16, 2  ;;  %v780_v61 = vld [vmem:[%s4794_s21 + $0x1c] sm:$0xf]  ;;  %s351_s11 = sand.u32 1, %s4645_s14  }
  0x21   : > { %v406_v24 = vor.u32 %v405_v18, %v401_v14  ;;  %v3770_v39 = vcombine.low %v936_v38, %v362_v11  ;;  %v419_v40 = vsel %vm399_vm1, %v414_v32, %v418_v33  ;;  %v426_v50 = vrot.slane %v424_v42, 1  ;;  %v4346_v9 = vld [vmem:[%s6147_s1 + $0x90] ss:$8 sps:$4 sm:$0xff]   ;;  %v4352_v12 = vld [vmem:[%s6147_s1 + $0x84] ss:$8 sps:$4 sm:$0xff]   ;;  %s3712_s12 = sshll.u32 %s351_s11, 1 }
  0x22   : > { %v791_v52 = vshrl.u32 %v3744_v46, 16  ;;  %v794_v53 = vshll.u32 %v3744_v46, 16  ;;  %v3731_v56 = vcombine.low %v4817_v22, %v368_v51  ;;  %v798_v57 = vrot.slane %v412_v25, 1  ;;  %v4350_v18 = vld [vmem:[%s6147_s1 + $0x80] ss:$8 sps:$4 sm:$0xff]   ;;  %s4182_s20 = sshll.u32 %s4737_s17, 5 }
  0x23   : > { %v411_v29 = vsel %vm399_vm1, %v406_v24, %v410_v19  ;;  %862 = vmatpush1.bf16.msra.mxu1 %v4342_v31  ;;  %v946_v44 = vrot.slane %v3770_v39, 2  ;;  %v427_v54 = vsel %vm399_vm1, %v422_v49, %v426_v50  ;;  %v428_v60 = vshrl.u32 %v4840_v34, 16  ;;  %v4354_v27 = vld [vmem:[%s6149_s3 + $0x70] ss:$8 sps:$4 sm:$0xff]   ;;  %v4365_v30 = vld [vmem:[%s6149_s3 + $0x11c] ss:$8 sps:$4 sm:$0xff]   ;;  %s6105_s26 = scalar_lea.hbm %s6156_s10, %s4182_s20 }
  0x24   : > { %3727 = vmatmul.mubr.msk.bf16.vlgmr.msra.gmra.mxu0 %vm451_vm0, %v411_v29  ;;  %v793_v58 = vrot.slane %v791_v52, 1  ;;  %v796_v59 = vrot.slane %v794_v53, 2  ;;  %v800_v63 = vor.u32 %v799_v55, %v798_v57  ;;  %vm789_vm3 = vsmask.f32 6400  ;;  %v4363_v29 = vld [vmem:[%s6149_s3 + $0x118] ss:$8 sps:$4 sm:$0xff]   ;;  %1580 = vmatprep.subr.bf16.mxu1 %v4365_v30 }
  0x25   : > { %506 = vmatprep.mubr.bf16.mxu0 %v6158_v2  ;;  %704 = vmatpush1.bf16.msra.mxu0 %v4332_v20  ;;  %v4860_v47 = vsel %vm945_vm2, %v946_v44, %v947_v43  ;;  %v430_v0 = vor.u32 %v428_v60, %v426_v50  ;;  %v802_v3 = vrot.slane %v420_v41, 1  ;;  %v803_v4 = vrot.slane %v416_v26, 2  ;;  %v4357_v31 = vld [vmem:[%s6149_s3 + $0x60] ss:$8 sps:$4 sm:$0xff]   ;;  %v4371_v32 = vld [vmem:[%s6149_s3 + $0x10c] ss:$8 sps:$4 sm:$0xff]  }
  0x26   : > { %3737 = vmatmul.mubr.msk.bf16.gmra.mxu1 %vm451_vm0, %v4802_v13  ;;  %705 = vmatprep.subr.bf16.mxu0 %v4341_v28  ;;  %v797_v62 = vor.u32 %v796_v59, %v793_v58  ;;  %v3757_v5 = vcombine.low %v4817_v22, %v780_v61  ;;  %v652_v6 = vrot.slane %v3744_v46, 1  ;;  %v653_v7 = vrot.slane %v4802_v13, 1  ;;  %v4356_v28 = vld [vmem:[%s6149_s3 + $0x74] ss:$8 sps:$4 sm:$0xff]   ;;  %v4368_v37 = vld [vmem:[%s6149_s3 + $0x44] ss:$8 sps:$4 sm:$0xff]  }
  0x27   : > { %621 = vmatprep.mubr.bf16.mxu1 %v6158_v2  ;;  %v804_v8 = vor.u32 %v803_v4, %v802_v3  ;;  %v655_v19 = vrot.slane %v4806_v17, 1  ;;  %v657_v21 = vrot.slane %v4840_v34, 1  ;;  %v4362_v33 = vld [vmem:[%s6149_s3 + $0x54] ss:$8 sps:$4 sm:$0xff]   ;;  %v4369_v34 = vld [vmem:[%s6149_s3 + $0x108] ss:$8 sps:$4 sm:$0xff]   ;;  %v1076_v30 = vlaneseq }
  0x28   : > { %v801_v1 = vsel %vm789_vm3, %v797_v62, %v800_v63  ;;  %v807_v10 = vshrl.u32 %v3757_v5, 16  ;;  %v810_v11 = vshll.u32 %v3757_v5, 16  ;;  %v654_v14 = vsel %vm651_vm4, %v652_v6, %v653_v7  ;;  %v4375_v38 = vld [vmem:[%s6149_s3 + $0xf8] ss:$8 sps:$4 sm:$0xff]   ;;  %v4380_v44 = vld [vmem:[%s6149_s3 + $0x24] ss:$8 sps:$4 sm:$0xff]  }
  0x29   : > { %706 = vmatpush1.bf16.msra.mxu0 %v4339_v35  ;;  %v805_v13 = vsel %vm789_vm3, %v800_v63, %v804_v8  ;;  %v656_v22 = vsel %vm651_vm4, %v653_v7, %v655_v19  ;;  %v951_v23 = vrot.slane %v3757_v5, 2  ;;  %v658_v25 = vsel %vm651_vm4, %v655_v19, %v657_v21  ;;  %v4377_v35 = vld [vmem:[%s6149_s3 + $0xfc] ss:$8 sps:$4 sm:$0xff]   ;;  %v4366_v39 = vld [vmem:[%s6149_s3 + $0x40] ss:$8 sps:$4 sm:$0xff]   ;;  %s353_s22 = scalar_lea.vmem [#allocation3], %s3712_s12 }
  0x2a   : > { %997 = vmatprep.subr.bf16.mxu0 %v4348_v36  ;;  %v809_v15 = vrot.slane %v807_v10, 1  ;;  %v812_v16 = vrot.slane %v810_v11, 2  ;;  %v4360_v36 = vld [vmem:[%s6149_s3 + $0x50] ss:$8 sps:$4 sm:$0xff]   ;;  %v4378_v46 = vld [vmem:[%s6149_s3 + $0x20] ss:$8 sps:$4 sm:$0xff]  }
  0x2b   : > { %v952_v26 = vsel %vm945_vm2, %v949_v45, %v951_v23  ;;  %v4372_v42 = vld [vmem:[%s6149_s3 + $0x30] ss:$8 sps:$4 sm:$0xff]   ;;  %vm1334_vm6 = vcmask 1043456   ;;  %vm1245_vm7 = vcmask 1039360   ;;  %vm1335_vm8 = vcmask 318468   ;;  %s3649_s27 = sshll.u32 %s353_s22, 4  ;;  %s6107_s27 = int_to_ptr.vmem [resolvable:$true] %s3649_s27 }
  0x2c   : > { %3728 = vmatmul.mubr.msk.bf16.gmra.mxu0 %vm451_vm0, %v419_v40  ;;  %v813_v20 = vor.u32 %v812_v16, %v809_v15  ;;  %v4374_v40 = vld [vmem:[%s6149_s3 + $0x34] ss:$8 sps:$4 sm:$0xff]   ;;  %vm5377_vm9 = vmor %vm1335_vm8, %vm1334_vm6  ;;  %vm1558_vm10 = vcmask 318464   ;;  %vm1344_vm11 = vcmask 1041408   ;;  %vm1345_vm12 = vsmask.f32 1280 }
  0x2d   : > { %516 = vmatprep.mubr.bf16.mxu0 %v6158_v2  ;;  %vm1347_vm13 = vcmask 316420   ;;  %vm1348_vm14 = vsmask.f32 5376  ;;  %vm5418_vm15 = vmand %vm1344_vm11, %vm1345_vm12  ;;  %vm2942_vm8 = vcmask 1047552   ;;  %s3636_s28 = scalar_lea.sflag [#allocation4], %s351_s11  ;;  %s4593_s17 = scalar_lea.vmem %s6107_s27, 32 }
  0x2e   : > { %3738 = vmatmul.mubr.msk.bf16.gmra.mxu1 %vm451_vm0, %v4806_v17  ;;  %v814_v24 = vsel %vm789_vm3, %v804_v8, %v813_v20  ;;  %v4359_v17 = vld [vmem:[%s6149_s3 + $0x64] ss:$8 sps:$4 sm:$0xff]   ;;  %vm2181_vm3 = vcmask 1044480   ;;  %p4594_p11 = scmp.ne.s32.totalorder %s6107_s27, %s4593_s17  ;;  %s4660_s29 = smov [#allocation3]  }
  0x2f   : > { %631 = vmatprep.mubr.bf16.mxu1 %v6158_v2  ;;  %s4597_s30 = sshll.u32 %s4660_s29, 4  ;;  %s4598_s30 = int_to_ptr.vmem [resolvable:$false] %s4597_s30 }
  0x30   : > { %p4595_p12 = pnand %p4594_p11, %p4754_p5  ;;  %s4599_s12 = scalar_lea.vmem %s4598_s30, 64 }
  0x31   : > { %p4600_p0 = scmp.lt.s32.totalorder %s6107_s27, %s4598_s30  ;;  %p4601_p1 = scmp.lt.s32.totalorder %s4599_s12, %s4593_s17 }
  0x32   : > { %p4596_p13 = pneg %p4595_p12 }
  0x33   : > { %p4602_p2 = por %p4601_p1, %p4600_p0 }
  0x34   : > { %3729 = vmatmul.mubr.msk.bf16.gmra.mxu0 %vm451_vm0, %v427_v54 }
  0x35   : > { %526 = vmatprep.mubr.bf16.mxu0 %v6158_v2  ;;  %p4603_p3 = pnand %p4602_p2, %p4596_p13 }
  0x36   : > { %3739 = vmatmul.mubr.msk.bf16.gmra.mxu1 %vm451_vm0, %v3731_v56 }
  0x37   : > { %879 = vmatprep.mubr.bf16.mxu1 %v6158_v2 }
  0x3c   : > { %3730 = vmatmul.mubr.msk.bf16.gmra.mxu0 %vm451_vm0, %v430_v0 }
  0x3d   : > { %723 = vmatprep.mubr.bf16.mxu0 %v6158_v2 }
  0x3e   : > { %3762 = vmatmul.mubr.msk.bf16.vlgmr.msra.gmra.mxu1 %vm451_vm0, %v801_v1 }
  0x3f   : > { %889 = vmatprep.mubr.bf16.mxu1 %v6158_v2  ;;  %1581 = vmatpush1.bf16.msra.mxu1 %v4363_v29 }
  0x40   : > { %1582 = vmatprep.subr.bf16.mxu1 %v4371_v32 }
  0x43   : > { %1583 = vmatpush1.bf16.msra.mxu1 %v4369_v34  ;;  %v5054_v34 = vshrl.u32 %v1076_v30, 7  ;;  %v1074_v30 = vld [vmem:[%s6148_s2] sm:$0x3] }
  0x44   : > { %3749 = vmatmul.mubr.msk.bf16.vlgmr.msra.gmra.mxu0 %vm451_vm0, %v654_v14  ;;  %1584 = vmatprep.subr.bf16.mxu1 %v4377_v35 }
  0x45   : > { %733 = vmatprep.mubr.bf16.mxu0 %v6158_v2  ;;  %998 = vmatpush1.bf16.msra.mxu0 %v4346_v9  ;;  %6168 = vst [vmem:[#allocation8_spill] sm:$0xff] %v5054_v34 }
  0x46   : > { %3763 = vmatmul.mubr.msk.bf16.gmra.mxu1 %vm451_vm0, %v805_v13  ;;  %999 = vmatprep.subr.bf16.mxu0 %v4352_v12 }
  0x47   : > { %899 = vmatprep.mubr.bf16.mxu1 %v6158_v2  ;;  %1585 = vmatpush1.bf16.msra.mxu1 %v4375_v38 }
  0x49   : > { %1000 = vmatpush1.bf16.msra.mxu0 %v4350_v18 }
  0x4a   : > { %1788 = vmatprep.subr.bf16.mxu0 %v4356_v28 }
  0x4c   : > { %3750 = vmatmul.mubr.msk.bf16.gmra.mxu0 %vm451_vm0, %v656_v22 }
  0x4d   : > { %743 = vmatprep.mubr.bf16.mxu0 %v6158_v2 }
  0x4e   : > { %3764 = vmatmul.mubr.msk.bf16.gmra.mxu1 %vm451_vm0, %v814_v24 }
  0x4f   : > { %909 = vmatprep.mubr.bf16.mxu1 %v6158_v2 }
  0x54   : > { %3751 = vmatmul.mubr.msk.bf16.gmra.mxu0 %vm451_vm0, %v658_v25 }
  0x55   : > { %753 = vmatprep.mubr.bf16.mxu0 %v6158_v2 }
  0x56   : > { %3765 = vmatmul.mubr.msk.bf16.gmra.mxu1 %vm451_vm0, %v813_v20 }
  0x5c   : > { %3752 = vmatmul.mubr.msk.bf16.gmra.mxu0 %vm451_vm0, %v657_v21 }
  0x5d   : > { %1017 = vmatprep.mubr.bf16.mxu0 %v6158_v2 }
  0x64   : > { %3775 = vmatmul.mubr.msk.bf16.vlgmr.msra.gmra.mxu0 %vm451_vm0, %v4860_v47 }
  0x65   : > { %1027 = vmatprep.mubr.bf16.mxu0 %v6158_v2  ;;  %1789 = vmatpush1.bf16.msra.mxu0 %v4354_v27 }
  0x66   : > { %1790 = vmatprep.subr.bf16.mxu0 %v4359_v17 }
  0x69   : > { %1791 = vmatpush1.bf16.msra.mxu0 %v4357_v31 }
  0x6a   : > { %1792 = vmatprep.subr.bf16.mxu0 %v4362_v33 }
  0x6c   : > { %3776 = vmatmul.mubr.msk.bf16.gmra.mxu0 %vm451_vm0, %v4865_v48 }
  0x6d   : > { %1037 = vmatprep.mubr.bf16.mxu0 %v6158_v2  ;;  %1793 = vmatpush1.bf16.msra.mxu0 %v4360_v36 }
  0x6e   : > { %1794 = vmatprep.subr.bf16.mxu0 %v4368_v37 }
  0x71   : > { %1795 = vmatpush1.bf16.msra.mxu0 %v4366_v39 }
  0x72   : > { %1796 = vmatprep.subr.bf16.mxu0 %v4374_v40  ;;  %v6163_v40 = vsub.s32 1, %v5054_v34 }
  0x74   : > { %3777 = vmatmul.mubr.msk.bf16.gmra.mxu0 %vm451_vm0, %v952_v26 }
  0x75   : > { %1047 = vmatprep.mubr.bf16.mxu0 %v6158_v2  ;;  %1797 = vmatpush1.bf16.msra.mxu0 %v4372_v42  ;;  %v6160_v2 = vmov 65535  }
  0x76   : > { %1798 = vmatprep.subr.bf16.mxu0 %v4380_v44 }
  0x79   : > { %1799 = vmatpush1.bf16.msra.mxu0 %v4378_v46 }
  0x7c   : > { %3778 = vmatmul.mubr.msk.bf16.gmra.mxu0 %vm451_vm0, %v951_v23  ;;  %vm5424_vm0 = vmand %vm1347_vm13, %vm1348_vm14 }
  0x7d   : > { %vm1350_vm1 = vmor %vm5424_vm0, %vm5418_vm15 }
  0xde   : > { %v4975_v41 = vpop.f32.mrf.mxu1 }
  0xe0   : > { %v4980_v43 = vpop.f32.mrf.mxu1 }
  0xe2   : > { %v4985_v45 = vpop.f32.mrf.mxu1 }
  0xe4   : > { %v498_v47 = vpop.f32.mrf.mxu0  ;;  %v4990_v48 = vpop.f32.mrf.mxu1 }
  0xe5   : > { %v604_v37 = vadd.f32 %v4975_v41, %v498_v47 }
  0xe6   : > { %v500_v49 = vpop.f32.mrf.mxu0  ;;  %v4992_v50 = vpop.f32.mrf.mxu1 }
  0xe7   : > { %v606_v42 = vadd.f32 %v4980_v43, %v500_v49  ;;  %v6171_v43 = vsub.s32 0, %v5054_v34 }
  0xe8   : > { %v502_v51 = vpop.f32.mrf.mxu0  ;;  %v4994_v52 = vpop.f32.mrf.mxu1 }
  0xe9   : > { %v608_v47 = vadd.f32 %v4985_v45, %v502_v51  ;;  %v5079_v49 = vrot.slane %v1074_v30, %v6171_v43 }
  0xea   : > { %v4996_v53 = vpop.f32.mrf.mxu0  ;;  %v4998_v54 = vpop.f32.mrf.mxu1 }
  0xec   : > { %v5000_v55 = vpop.f32.mrf.mxu0  ;;  %v5002_v56 = vpop.f32.mrf.mxu1 }
  0xed   : > { %v614_v45 = vadd.f32 %v4992_v50, %v5000_v55 }
  0xee   : > { %v5004_v57 = vpop.f32.mrf.mxu0  ;;  %v5006_v58 = vpop.f32.mrf.mxu1 }
  0xef   : > { %v616_v43 = vadd.f32 %v4994_v52, %v5004_v57 }
  0xf0   : > { %v5008_v59 = vpop.f32.mrf.mxu0  ;;  %v5010_v60 = vpop.f32.mrf.mxu1 }
  0xf1   : > { %v618_v34 = vadd.f32 %v4998_v54, %v5008_v59 }
  0xf2   : > { %v5012_v61 = vpop.f32.mrf.mxu0  ;;  %v5014_v62 = vpop.f32.mrf.mxu1 }
  0xf4   : > { %v5016_v63 = vpop.f32.mrf.mxu0  ;;  %v5018_v0 = vpop.f32.mrf.mxu1 }
  0xf6   : > { %v5020_v1 = vpop.f32.mrf.mxu0  ;;  %v5022_v3 = vpop.f32.mrf.mxu1 }
  0xf8   : > { %v5024_v4 = vpop.f32.mrf.mxu0  ;;  %v5026_v5 = vpop.f32.mrf.mxu1 }
  0xfa   : > { %v5028_v6 = vpop.f32.mrf.mxu0  ;;  %v5030_v7 = vpop.f32.mrf.mxu1 }
  0xfb   : > { %v630_v52 = vadd.f32 %v5018_v0, %v5028_v6 }
  0xfc   : > { %v5032_v8 = vpop.f32.mrf.mxu0  ;;  %v5034_v9 = vpop.f32.mrf.mxu1 }
  0xfd   : > { %v634_v54 = vadd.f32 %v5022_v3, %v5032_v8 }
  0xfe   : > { %v5036_v10 = vpop.f32.mrf.mxu0  ;;  %v881_v11 = vpop.f32.mrf.mxu1 }
 0x100   : > { %v5038_v12 = vpop.f32.mrf.mxu0  ;;  %v883_v14 = vpop.f32.mrf.mxu1 }
 0x102   : > { %v5040_v13 = vpop.f32.mrf.mxu0  ;;  %v885_v15 = vpop.f32.mrf.mxu1 }
 0x103   : > { %v5117_v3 = vadd.f32 %v5034_v9, %v5040_v13 }
 0x104   : > { %v725_v16 = vpop.f32.mrf.mxu0  ;;  %v5042_v19 = vpop.f32.mrf.mxu1 }
 0x105   : > { %v764_v44 = vadd.f32 %v725_v16, %v604_v37  ;;  %v5083_v16 = vrot.slane %v1074_v30, %v6163_v40  ;;  %v620_v30 = vadd.f32 %v5002_v56, %v5012_v61 }
 0x106   : > { %v727_v18 = vpop.f32.mrf.mxu0  ;;  %v5044_v22 = vpop.f32.mrf.mxu1 }
 0x107   : > { %v765_v39 = vadd.f32 %v727_v18, %v606_v42  ;;  %v920_v51 = vadd.f32 %v881_v11, %v764_v44  ;;  %v628_v11 = vadd.f32 %v5014_v62, %v5024_v4 }
 0x108   : > { %v729_v20 = vpop.f32.mrf.mxu0  ;;  %v5046_v25 = vpop.f32.mrf.mxu1 }
 0x109   : > { %v766_v18 = vadd.f32 %v729_v20, %v608_v47  ;;  %v921_v50 = vadd.f32 %v883_v14, %v765_v39 }
 0x10a   : > { %v731_v21 = vpop.f32.mrf.mxu0  ;;  %v5048_v28 = vpop.f32.mrf.mxu1 }
 0x10b   : > { %v922_v59 = vadd.f32 %v885_v15, %v766_v18 }
 0x10c   : > { %v735_v23 = vpop.f32.mrf.mxu0  ;;  %v5050_v31 = vpop.f32.mrf.mxu1 }
 0x10d   : > { %v768_v56 = vadd.f32 %v735_v23, %v614_v45 }
 0x10e   : > { %v737_v24 = vpop.f32.mrf.mxu0  ;;  %v5056_v35 = vpop.f32.mrf.mxu1 }
 0x10f   : > { %6169 = vst [vmem:[#allocation9_spill] sm:$0xff] %v5056_v35  ;;  %v1572_v35 = vsel %vm1571_vm5, 4294967295, %v6160_v2  ;;  %v610_v2 = vadd.f32 %v4990_v48, %v4996_v53  ;;  %v626_v48 = vadd.f32 %v5010_v60, %v5020_v1  ;;  %v638_v60 = vadd.f32 %v5030_v7, %v5038_v12 }
 0x110   : > { %v739_v26 = vpop.f32.mrf.mxu0  ;;  %v5066_v46 = vpop.f32.mrf.mxu1  ;;  %v5086_v37 = vsel %vm1334_vm6, %v1572_v35, 0  ;;  %v624_v35 = vadd.f32 %v5006_v58, %v5016_v63  ;;  %v769_v58 = vadd.f32 %v737_v24, %v616_v43  ;;  %v924_v14 = vadd.f32 %v5044_v22, %v768_v56 }
 0x111   : > { %v767_v53 = vadd.f32 %v731_v21, %v610_v2  ;;  %v770_v61 = vadd.f32 %v739_v26, %v618_v34  ;;  %v636_v2 = vadd.f32 %v5026_v5, %v5036_v10  ;;  %vm2782_vm5 = vcmask 1040384  }
 0x112   : > { %v741_v27 = vpop.f32.mrf.mxu0  ;;  %v905_v42 = vpop.f32.mrf.mxu1  ;;  %v925_v12 = vadd.f32 %v5046_v25, %v769_v58 }
 0x113   : > { %v771_v62 = vadd.f32 %v741_v27, %v620_v30  ;;  %v923_v4 = vadd.f32 %v5042_v19, %v767_v53  ;;  %v926_v21 = vadd.f32 %v5048_v28, %v770_v61  ;;  %v4383_v19 = vld [vmem:[%s6149_s3 + $0xec] ss:$8 sps:$4 sm:$0xff]   ;;  %v4381_v28 = vld [vmem:[%s6149_s3 + $0xe8] ss:$8 sps:$4 sm:$0xff]   ;;  %v1381_v61 = vld [vmem:[%s6149_s3 + $0xa0] sm:$0xff] }
 0x114   : > { %v745_v17 = vpop.f32.mrf.mxu0  ;;  %v907_v63 = vpop.f32.mrf.mxu1  ;;  %1586 = vmatprep.subr.bf16.mxu1 %v4383_v19 }
 0x115   : > { %v772_v6 = vadd.f32 %v745_v17, %v624_v35  ;;  %v927_v22 = vadd.f32 %v5050_v31, %v771_v62  ;;  %v4386_v17 = vld [vmem:[%s6149_s3 + $0x14] ss:$8 sps:$4 sm:$0xff]   ;;  %1587 = vmatpush1.bf16.msra.mxu1 %v4381_v28  ;;  %v3867_v62 = vcombine.high %v1381_v61, %v1381_v61 }
 0x116   : > { %v747_v29 = vpop.f32.mrf.mxu0  ;;  %v911_v23 = vpop.f32.mrf.mxu1  ;;  %1800 = vmatprep.subr.bf16.mxu0 %v4386_v17 }
 0x117   : > { %v773_v15 = vadd.f32 %v747_v29, %v626_v48  ;;  %v6172_v29 = vld [vmem:[#allocation9_spill] sm:$0xff] }
 0x118   : > { %v749_v32 = vpop.f32.mrf.mxu0  ;;  %v913_v18 = vpop.f32.mrf.mxu1 }
 0x119   : > { %v774_v5 = vadd.f32 %v749_v32, %v628_v11  ;;  %v928_v32 = vadd.f32 %v6172_v29, %v772_v6  ;;  %v929_v39 = vadd.f32 %v5066_v46, %v773_v15  ;;  %v4389_v46 = vld [vmem:[%s6149_s3 + $0xdc] ss:$8 sps:$4 sm:$0xff]  }
 0x11a   : > { %v5052_v33 = vpop.f32.mrf.mxu0  ;;  %1588 = vmatprep.subr.bf16.mxu1 %v4389_v46 }
 0x11b   : > { %v775_v24 = vadd.f32 %v5052_v33, %v630_v52  ;;  %v4387_v52 = vld [vmem:[%s6149_s3 + $0xd8] ss:$8 sps:$4 sm:$0xff]  }
 0x11c   : > { %v5058_v36 = vpop.f32.mrf.mxu0  ;;  %1589 = vmatpush1.bf16.msra.mxu1 %v4387_v52 }
 0x11d   : > { %v776_v26 = vadd.f32 %v5058_v36, %v634_v54  ;;  %v4384_v36 = vld [vmem:[%s6149_s3 + $0x10] ss:$8 sps:$4 sm:$0xff]   ;;  %v4392_v54 = vld [vmem:[%s6149_s3 + $0x4] ss:$8 sps:$4 sm:$0xff]  }
 0x11e   : > { %v5061_v38 = vpop.f32.mrf.mxu0  ;;  %1801 = vmatpush1.bf16.msra.mxu0 %v4384_v36 }
 0x11f   : > { %6170 = vst [vmem:[#allocation10_spill] sm:$0xff] %v5061_v38  ;;  %1802 = vmatprep.subr.bf16.mxu0 %v4392_v54 }
 0x120   : > { %v5072_v41 = vpop.f32.mrf.mxu0 }
 0x121   : > { %v778_v53 = vadd.f32 %v5072_v41, %v638_v60  ;;  %v4390_v41 = vld [vmem:[%s6149_s3] ss:$8 sps:$4 sm:$0xff]  }
 0x122   : > { %v5075_v38 = vpop.f32.mrf.mxu0  ;;  %1803 = vmatpush1.bf16.msra.mxu0 %v4390_v41 }
 0x123   : > { %v779_v36 = vadd.f32 %v5075_v38, %v5117_v3 }
 0x124   : > { %v1019_v40 = vpop.f32.mrf.mxu0 }
 0x125   : > { %v1058_v55 = vadd.f32 %v1019_v40, %v920_v51  ;;  %v5151_v40 = vadd.f32 %v905_v42, %v774_v5  ;;  %v5164_v42 = vadd.f32 %v907_v63, %v775_v24 }
 0x126   : > { %v1021_v57 = vpop.f32.mrf.mxu0  ;;  %v6173_v44 = vld [vmem:[#allocation10_spill] sm:$0xff] }
 0x127   : > { %v1059_v20 = vadd.f32 %v1021_v57, %v921_v50  ;;  %v5113_v1 = vadd.f32 %v5079_v49, %v1058_v55  ;;  %v777_v47 = vadd.f32 %v6173_v44, %v636_v2  ;;  %v5166_v50 = vadd.f32 %v911_v23, %v776_v26 }
 0x128   : > { %v1023_v0 = vpop.f32.mrf.mxu0 }
 0x129   : > { %v1060_v8 = vadd.f32 %v1023_v0, %v922_v59  ;;  %v5122_v10 = vadd.f32 %v5083_v16, %v1059_v20  ;;  %v1102_v27 = vmax.f32 %v5113_v1, 0.0  ;;  %v5187_v63 = vadd.f32 %v913_v18, %v777_v47  ;;  %v4403_v18 = vld [vmem:[%s6149_s3 + $0x94] ss:$8 sps:$4 sm:$0xff]  }
 0x12a   : > { %v1025_v7 = vpop.f32.mrf.mxu0 }
 0x12b   : > { %v5127_v9 = vadd.f32 %v5079_v49, %v1060_v8  ;;  %v1061_v13 = vadd.f32 %v1025_v7, %v923_v4  ;;  %v1103_v45 = vmax.f32 %v5122_v10, 0.0  ;;  %v1135_v55 = vrot.slane %v1102_v27, 1  ;;  %v4395_v8 = vld [vmem:[%s6149_s3 + $0xcc] ss:$8 sps:$4 sm:$0xff]   ;;  %v4393_v10 = vld [vmem:[%s6149_s3 + $0xc8] ss:$8 sps:$4 sm:$0xff]  }
 0x12c   : > { %v1029_v25 = vpop.f32.mrf.mxu0  ;;  %v3866_v7 = vcombine.low %v1381_v61, %v1381_v61  ;;  %1590 = vmatprep.subr.bf16.mxu1 %v4395_v8 }
 0x12d   : > { %v1104_v34 = vmax.f32 %v5127_v9, 0.0  ;;  %v5145_v31 = vadd.f32 %v5083_v16, %v1061_v13  ;;  %v1062_v33 = vadd.f32 %v1029_v25, %v924_v14  ;;  %v1138_v20 = vrot.slane %v1103_v45, 1  ;;  %1591 = vmatpush1.bf16.msra.mxu1 %v4393_v10  ;;  %v4406_v9 = vld [vmem:[%s6149_s3 + $0xac] ss:$8 sps:$4 sm:$0xff]  }
 0x12e   : > { %v1031_v51 = vpop.f32.mrf.mxu0  ;;  %v1783_v25 = vand.u32 %v3866_v7, %v5086_v37 }
 0x12f   : > { %v1136_v43 = vrot.slane %v1104_v34, 1  ;;  %v1105_v30 = vmax.f32 %v5145_v31, 0.0  ;;  %v5159_v35 = vadd.f32 %v5079_v49, %v1062_v33  ;;  %v1063_v48 = vadd.f32 %v1031_v51, %v925_v12 }
 0x130   : > { %v1033_v11 = vpop.f32.mrf.mxu0  ;;  %v1786_v12 = vand.u32 %v3867_v62, %v5086_v37 }
 0x131   : > { %v1139_v56 = vrot.slane %v1105_v30, 1  ;;  %v1106_v57 = vmax.f32 %v5159_v35, 0.0  ;;  %v5179_v59 = vadd.f32 %v5083_v16, %v1063_v48  ;;  %v1064_v58 = vadd.f32 %v1033_v11, %v926_v21  ;;  %v915_v21 = vpop.f32.mrf.mxu1 }
 0x132   : > { %v1035_v2 = vpop.f32.mrf.mxu0  ;;  %v1137_v60 = vsel %vm651_vm4, %v1135_v55, %v1136_v43  ;;  %1814 = vmatprep.subr.bf16.mxu0 %v1786_v12  ;;  %v5227_v44 = vadd.f32 %v915_v21, %v778_v53  ;;  %v4401_v53 = vld [vmem:[%s6149_s3 + $0x90] ss:$8 sps:$4 sm:$0xff]  }
 0x133   : > { %v1141_v1 = vrot.slane %v1106_v57, 1  ;;  %v1107_v0 = vmax.f32 %v5179_v59, 0.0  ;;  %v5194_v4 = vadd.f32 %v5079_v49, %v1064_v58  ;;  %v1065_v6 = vadd.f32 %v1035_v2, %v927_v22  ;;  %1815 = vmatpush2.bf16.msra.mxu0 %v1783_v25  ;;  %v4409_v2 = vld [vmem:[%s6149_s3 + $0x84] ss:$8 sps:$4 sm:$0xff]  }
 0x134   : > { %v1039_v14 = vpop.f32.mrf.mxu0  ;;  %v1140_v15 = vsel %vm651_vm4, %v1138_v20, %v1139_v56  ;;  %v5200_v5 = vmax.f32 %v1102_v27, %v1137_v60  ;;  %1816 = vmatprep.subr.bf16.mxu0 %v4403_v18  ;;  %v3807_v60 = vld [vmem:[%s6149_s3 + $0x148] sm:$0xff] }
 0x135   : > { %v1143_v23 = vrot.slane %v1107_v0, 1  ;;  %v1108_v13 = vmax.f32 %v5194_v4, 0.0  ;;  %v5210_v19 = vadd.f32 %v5083_v16, %v1065_v6  ;;  %v1066_v22 = vadd.f32 %v1039_v14, %v928_v32  ;;  %v4400_v32 = vld [vmem:[%s6149_s3 + $0xbc] ss:$8 sps:$4 sm:$0xff]   ;;  %v4407_v6 = vld [vmem:[%s6149_s3 + $0x80] ss:$8 sps:$4 sm:$0xff]  }
 0x136   : > { %v1041_v24 = vpop.f32.mrf.mxu0  ;;  %v5212_v26 = vmax.f32 %v1103_v45, %v1140_v15  ;;  %v1142_v27 = vsel %vm651_vm4, %v1136_v43, %v1141_v1  ;;  %v917_v43 = vpop.f32.mrf.mxu1  ;;  %1592 = vmatprep.subr.bf16.mxu1 %v4400_v32  ;;  %v3836_v10 = vcombine.low %v3807_v60, %v3807_v60 }
 0x137   : > { %v1145_v28 = vrot.slane %v1108_v13, 1  ;;  %v1109_v17 = vmax.f32 %v5210_v19, 0.0  ;;  %v5220_v29 = vadd.f32 %v5079_v49, %v1066_v22  ;;  %v1067_v33 = vadd.f32 %v1041_v24, %v929_v39  ;;  %v4398_v39 = vld [vmem:[%s6149_s3 + $0xb8] ss:$8 sps:$4 sm:$0xff]   ;;  %1817 = vmatpush2.bf16.msra.mxu0 %v4401_v53 }
 0x138   : > { %v4266_v47 = vpack.i.bf16 %v5212_v26, %v5200_v5  ;;  %v1043_v45 = vpop.f32.mrf.mxu0  ;;  %v1144_v51 = vsel %vm651_vm4, %v1139_v56, %v1143_v23  ;;  %v5251_v11 = vmax.f32 %v1104_v34, %v1142_v27  ;;  %1593 = vmatpush1.bf16.msra.mxu1 %v4398_v39  ;;  %v935_v34 = vadd.f32 %v917_v43, %v779_v36  ;;  %v4416_v27 = vld [vmem:[%s6149_s3 + $0x26c] ss:$8 sps:$4 sm:$0xff]   ;;  %v4417_v53 = vld [vmem:[%s6149_s3 + $0x138] ss:$8 sps:$4 sm:$0xff]  }
 0x139   : > { %v1147_v38 = vrot.slane %v1109_v17, 1  ;;  %v1110_v3 = vmax.f32 %v5220_v29, 0.0  ;;  %v5242_v48 = vadd.f32 %v5083_v16, %v1067_v33  ;;  %v1068_v46 = vadd.f32 %v1043_v45, %v5151_v40  ;;  %1594 = vmatprep.subr.bf16.mxu1 %v4406_v9  ;;  %1818 = vmatprep.subr.bf16.mxu0 %v4409_v2 }
 0x13a   : > { %4267 = vrot.lane.b32.xlu0 %v4266_v47, %s4657_s15  ;;  %v1045_v55 = vpop.f32.mrf.mxu0  ;;  %v5255_v52 = vmax.f32 %v1105_v30, %v1144_v51  ;;  %v1146_v54 = vsel %vm651_vm4, %v1141_v1, %v1145_v28  ;;  %v1575_v47 = vand.u32 %v3836_v10, %v5086_v37 }
 0x13b   : > { %v1149_v40 = vrot.slane %v1110_v3, 1  ;;  %v1111_v56 = vmax.f32 %v5242_v48, 0.0  ;;  %v5262_v58 = vadd.f32 %v5079_v49, %v1068_v46  ;;  %v1069_v41 = vadd.f32 %v1045_v55, %v5164_v42  ;;  %v4404_v42 = vld [vmem:[%s6149_s3 + $0xa8] ss:$8 sps:$4 sm:$0xff]   ;;  %1819 = vmatpush2.bf16.msra.mxu0 %v4407_v6 }
 0x13c   : > { %v4271_v31 = vpack.i.bf16 %v5255_v52, %v5251_v11  ;;  %v1049_v30 = vpop.f32.mrf.mxu0  ;;  %v1148_v61 = vsel %vm651_vm4, %v1143_v23, %v1147_v38  ;;  %v5273_v20 = vmax.f32 %v1106_v57, %v1146_v54  ;;  %1595 = vmatpush1.bf16.msra.mxu1 %v4404_v42  ;;  %2323 = vmatprep.subr.bf16.mxu0 %v4416_v27 }
 0x13d   : > { %v1151_v62 = vrot.slane %v1111_v56, 1  ;;  %v1112_v1 = vmax.f32 %v5262_v58, 0.0  ;;  %v1097_v35 = vadd.f32 %v5083_v16, %v1069_v41  ;;  %v1070_v57 = vadd.f32 %v1049_v30, %v5166_v50  ;;  %v4425_v58 = vld [vmem:[%s6149_s3 + $0x12c] ss:$8 sps:$4 sm:$0xff]  }
 0x13e   : > { %4272 = vrot.lane.b32.xlu0 %v4271_v31, %s4657_s15  ;;  %v1051_v8 = vpop.f32.mrf.mxu0  ;;  %v5293_v14 = vmax.f32 %v1107_v0, %v1148_v61  ;;  %v1150_v15 = vsel %vm651_vm4, %v1145_v28, %v1149_v40  ;;  %v3837_v0 = vcombine.high %v3807_v60, %v3807_v60 }
 0x13f   : > { %v1153_v7 = vrot.slane %v1112_v1, 1  ;;  %v1113_v12 = vmax.f32 %v1097_v35, 0.0  ;;  %v1098_v50 = vadd.f32 %v5079_v49, %v1070_v57  ;;  %v1071_v21 = vadd.f32 %v1051_v8, %v5187_v63 }
 0x140   : > { %v4276_v23 = vpack.i.bf16 %v5293_v14, %v5273_v20  ;;  %v1053_v22 = vpop.f32.mrf.mxu0  ;;  %v1152_v24 = vsel %vm651_vm4, %v1147_v38, %v1151_v62  ;;  %v5303_v59 = vmax.f32 %v1108_v13, %v1150_v15  ;;  %v1578_v36 = vand.u32 %v3837_v0, %v5086_v37 }
 0x141   : > { %v1155_v25 = vrot.slane %v1113_v12, 1  ;;  %v1114_v28 = vmax.f32 %v1098_v50, 0.0  ;;  %v1099_v63 = vadd.f32 %v5083_v16, %v1071_v21  ;;  %v1072_v33 = vadd.f32 %v1053_v22, %v5227_v44 }
 0x142   : > { %4277 = vrot.lane.b32.xlu1 %v4276_v23, %s4657_s15  ;;  %v1055_v32 = vpop.f32.mrf.mxu0  ;;  %v5313_v4 = vmax.f32 %v1109_v17, %v1152_v24  ;;  %v1154_v13 = vsel %vm651_vm4, %v1149_v40, %v1153_v7  ;;  %1606 = vmatprep.subr.bf16.mxu1 %v1578_v36  ;;  %v4419_v17 = vld [vmem:[%s6149_s3 + $0x13c] ss:$8 sps:$4 sm:$0xff]  }
 0x143   : > { %v1157_v45 = vrot.slane %v1114_v28, 1  ;;  %v1115_v51 = vmax.f32 %v1099_v63, 0.0  ;;  %v1100_v39 = vadd.f32 %v5079_v49, %v1072_v33  ;;  %v1073_v18 = vadd.f32 %v1055_v32, %v935_v34  ;;  %1607 = vmatpush2.bf16.msra.mxu1 %v1575_v47  ;;  %v4423_v34 = vld [vmem:[%s6149_s3 + $0x128] ss:$8 sps:$4 sm:$0xff]  }
 0x144   : > { %v4281_v44 = vpack.i.bf16 %v5313_v4, %v5303_v59  ;;  %v1156_v43 = vsel %vm651_vm4, %v1151_v62, %v1155_v25  ;;  %v5324_v19 = vmax.f32 %v1110_v3, %v1154_v13  ;;  %1608 = vmatprep.subr.bf16.mxu1 %v4419_v17  ;;  %v4433_v62 = vld [vmem:[%s6149_s3 + $0x1c4] ss:$8 sps:$4 sm:$0xff]  }
 0x145   : > { %v1159_v38 = vrot.slane %v1115_v51, 1  ;;  %v1116_v48 = vmax.f32 %v1100_v39, 0.0  ;;  %v1101_v49 = vadd.f32 %v5083_v16, %v1073_v18  ;;  %v5330_v46 = vmax.f32 %v1111_v56, %v1156_v43 }
 0x146   : > { %4282 = vrot.lane.b32.xlu1 %v4281_v44, %s4657_s15  ;;  %v1158_v29 = vsel %vm651_vm4, %v1153_v7, %v1157_v45 }
 0x147   : > { %v1161_v3 = vrot.slane %v1116_v48, 1  ;;  %v1117_v55 = vmax.f32 %v1101_v49, 0.0  ;;  %v4286_v54 = vpack.i.bf16 %v5330_v46, %v5324_v19  ;;  %v1160_v40 = vsel %vm651_vm4, %v1155_v25, %v1159_v38  ;;  %1609 = vmatpush2.bf16.msra.mxu1 %v4417_v53 }
 0x148   : > { %v5340_v16 = vmax.f32 %v1112_v1, %v1158_v29  ;;  %v5342_v56 = vmax.f32 %v1113_v12, %v1160_v40  ;;  %1610 = vmatprep.subr.bf16.mxu1 %v4425_v58 }
 0x149   : > { %v1163_v41 = vrot.slane %v1117_v55, 1  ;;  %4287 = vrot.lane.b32.xlu0 %v4286_v54, %s4657_s15  ;;  %v1162_v9 = vsel %vm651_vm4, %v1157_v45, %v1161_v3  ;;  %v5354_v30 = vmax.f32 %v1116_v48, %v1161_v3  ;;  %v4422_v54 = vld [vmem:[%s6149_s3 + $0x25c] ss:$8 sps:$4 sm:$0xff]  }
 0x14a   : > { %v4291_v31 = vpack.i.bf16 %v5342_v56, %v5340_v16  ;;  %v5360_v2 = vmax.f32 %v1114_v28, %v1162_v9 }
 0x14b   : > { %v5356_v61 = vmax.f32 %v1117_v55, %v1163_v41  ;;  %v1164_v42 = vsel %vm651_vm4, %v1159_v38, %v1163_v41  ;;  %1611 = vmatpush2.bf16.msra.mxu1 %v4423_v34 }
 0x14c   : > { %4292 = vrot.lane.b32.xlu1 %v4291_v31, %s4657_s15  ;;  %v5362_v60 = vmax.f32 %v1115_v51, %v1164_v42  ;;  %2034 = vmatprep.subr.bf16.mxu1 %v4433_v62 }
 0x14d   : > { %v4301_v1 = vpack.i.bf16 %v5356_v61, %v5354_v30 }
 0x14e   : > { %v4296_v35 = vpack.i.bf16 %v5362_v60, %v5360_v2 }
 0x150   : > { %4302 = vrot.lane.b32.xlu1 %v4301_v1, %s4657_s15  ;;  %4297 = vrot.lane.b32.xlu0 %v4296_v35, %s4657_s15  ;;  %v4420_v35 = vld [vmem:[%s6149_s3 + $0x258] ss:$8 sps:$4 sm:$0xff]  }
 0x1ac   : > { %v4268_v57 = vpop.permute.xlu0 %4267 }
 0x1ad   : > { %v4270_v6 = vunpack.i.h.bf16 %v4268_v57  ;;  %v4269_v8 = vunpack.i.l.bf16 %v4268_v57 }
 0x1af   : > { %v1271_v15 = vmax.f32 %v5212_v26, %v4270_v6  ;;  %v1246_v10 = vsel %vm1245_vm7, %v4269_v8, %v4270_v6 }
 0x1b0   : > { %v1270_v7 = vmax.f32 %v5200_v5, %v1246_v10  ;;  %v4273_v12 = vpop.permute.xlu0 %4272 }
 0x1b1   : > { %v4275_v21 = vunpack.i.h.bf16 %v4273_v12  ;;  %v4274_v23 = vunpack.i.l.bf16 %v4273_v12  ;;  %v4429_v12 = vld [vmem:[%s6149_s3 + $0x24c] ss:$8 sps:$4 sm:$0xff]  }
 0x1b2   : > { %v4185_v22 = vpack.c.bf16 %v1271_v15, %v1270_v7 }
 0x1b3   : > { %v1273_v24 = vmax.f32 %v5255_v52, %v4275_v21  ;;  %v1247_v0 = vsel %vm1245_vm7, %v4274_v23, %v4275_v21 }
 0x1b4   : > { %1337 = vst.msk [vmem:[#allocation2] sm:$0xff] %vm5377_vm9, %v4185_v22  ;;  %v1272_v26 = vmax.f32 %v5251_v11, %v1247_v0  ;;  %v4278_v27 = vpop.permute.xlu1 %4277 }
 0x1b5   : > { %v4280_v5 = vunpack.i.h.bf16 %v4278_v27  ;;  %v4279_v25 = vunpack.i.l.bf16 %v4278_v27  ;;  %v4427_v27 = vld [vmem:[%s6149_s3 + $0x248] ss:$8 sps:$4 sm:$0xff]  }
 0x1b6   : > { %v4186_v28 = vpack.c.bf16 %v1273_v24, %v1272_v26 }
 0x1b7   : > { %v1275_v63 = vmax.f32 %v5293_v14, %v4280_v5  ;;  %v1248_v33 = vsel %vm1245_vm7, %v4279_v25, %v4280_v5 }
 0x1b8   : > { %1338 = vst.msk [vmem:[#allocation2 + $0x8] sm:$0xff] %vm5377_vm9, %v4186_v28  ;;  %v1274_v52 = vmax.f32 %v5273_v20, %v1248_v33  ;;  %v4283_v32 = vpop.permute.xlu1 %4282  ;;  %v4436_v28 = vld [vmem:[%s6149_s3 + $0x23c] ss:$8 sps:$4 sm:$0xff]  }
 0x1b9   : > { %v4285_v13 = vunpack.i.h.bf16 %v4283_v32  ;;  %v4284_v36 = vunpack.i.l.bf16 %v4283_v32 }
 0x1ba   : > { %v4187_v47 = vpack.c.bf16 %v1275_v63, %v1274_v52 }
 0x1bb   : > { %v1277_v45 = vmax.f32 %v5313_v4, %v4285_v13  ;;  %v1249_v11 = vsel %vm1245_vm7, %v4284_v36, %v4285_v13  ;;  %v4288_v51 = vpop.permute.xlu0 %4287  ;;  %v1354_v49 = vld [vmem:[#allocation2] sm:$0xff] }
 0x1bc   : > { %1339 = vst.msk [vmem:[#allocation2 + $0x10] sm:$0xff] %vm5377_vm9, %v4187_v47  ;;  %v1276_v14 = vmax.f32 %v5303_v59, %v1249_v11  ;;  %v4290_v39 = vunpack.i.h.bf16 %v4288_v51  ;;  %v4289_v18 = vunpack.i.l.bf16 %v4288_v51  ;;  %v1382_v62 = vld [vmem:[#allocation2] sm:$0xee]  ;;  %v4439_v51 = vld [vmem:[%s6149_s3 + $0x1b4] ss:$8 sps:$4 sm:$0xff]  }
 0x1bd   : > { %v4431_v36 = vld [vmem:[%s6149_s3 + $0x1c0] ss:$8 sps:$4 sm:$0xff]  }
 0x1be   : > { %v4188_v44 = vpack.c.bf16 %v1277_v45, %v1276_v14  ;;  %v1279_v43 = vmax.f32 %v5330_v46, %v4290_v39  ;;  %v1250_v20 = vsel %vm1245_vm7, %v4289_v18, %v4290_v39  ;;  %v4293_v17 = vpop.permute.xlu1 %4292  ;;  %v4414_v46 = vld [vmem:[%s6149_s3 + $0x268] ss:$8 sps:$4 sm:$0xff]   ;;  %v4434_v11 = vld [vmem:[%s6149_s3 + $0x238] ss:$8 sps:$4 sm:$0xff]   ;;  %v4443_v18 = vld [vmem:[%s6149_s3 + $0x22c] ss:$8 sps:$4 sm:$0xff]  }
 0x1bf   : > { %v1278_v38 = vmax.f32 %v5324_v19, %v1250_v20  ;;  %v4295_v4 = vunpack.i.h.bf16 %v4293_v17  ;;  %v4294_v48 = vunpack.i.l.bf16 %v4293_v17  ;;  %v5399_v53 = vld [vmem:[#allocation2 + $0x8] sm:$0xff]  ;;  %v4437_v20 = vld [vmem:[%s6149_s3 + $0x1b0] ss:$8 sps:$4 sm:$0xff]  }
 0x1c0   : > { %1340 = vst.msk [vmem:[#allocation2 + $0x18] sm:$0xff] %vm5377_vm9, %v4188_v44  ;;  %v3842_v59 = vcombine.low %v1354_v49, %v5399_v53  ;;  %v3843_v29 = vcombine.high %v1354_v49, %v5399_v53  ;;  %v3809_v6 = vcombine.high %v1382_v62, %v5399_v53  ;;  %v4441_v17 = vld [vmem:[%s6149_s3 + $0x228] ss:$8 sps:$4 sm:$0xff]  }
 0x1c1   : > { %v4189_v19 = vpack.c.bf16 %v1279_v43, %v1278_v38  ;;  %v1281_v3 = vmax.f32 %v5342_v56, %v4295_v4  ;;  %v1251_v55 = vsel %vm1245_vm7, %v4294_v48, %v4295_v4  ;;  %v4447_v48 = vld [vmem:[%s6149_s3 + $0x1a4] ss:$8 sps:$4 sm:$0xff]  }
 0x1c2   : > { %v1280_v40 = vmax.f32 %v5340_v16, %v1251_v55  ;;  %3868 = vmatprep.mubr.msk.bf16.mxu0 %vm1558_vm10, %v3843_v29  ;;  %v4303_v58 = vpop.permute.xlu1 %4302  ;;  %v4298_v41 = vpop.permute.xlu0 %4297  ;;  %v1438_v25 = vrot.slane %v3809_v6, 1  ;;  %v4445_v55 = vld [vmem:[%s6149_s3 + $0x1a0] ss:$8 sps:$4 sm:$0xff]   ;;  %v4453_v16 = vld [vmem:[%s6149_s3 + $0x190] ss:$8 sps:$4 sm:$0xff]  }
 0x1c3   : > { %1341 = vst.msk [vmem:[#allocation2 + $0x20] sm:$0xff] %vm5377_vm9, %v4189_v19  ;;  %1821 = vmatmul.mubr.bf16.vlgmr.msra.gmra.mxu0 %v3842_v59  ;;  %v4305_v9 = vunpack.i.h.bf16 %v4303_v58  ;;  %v4304_v34 = vunpack.i.l.bf16 %v4303_v58  ;;  %v4300_v31 = vunpack.i.h.bf16 %v4298_v41  ;;  %v4299_v42 = vunpack.i.l.bf16 %v4298_v41  ;;  %v5431_v57 = vld [vmem:[#allocation2 + $0x10] sm:$0xff]  ;;  %v4451_v19 = vld [vmem:[%s6149_s3 + $0x21c] ss:$8 sps:$4 sm:$0xff]  }
 0x1c4   : > { %v4190_v1 = vpack.c.bf16 %v1281_v3, %v1280_v40  ;;  %2324 = vmatpush1.bf16.msra.mxu0 %v4414_v46  ;;  %v4000_v24 = vcombine.high %v5399_v53, %v5431_v57  ;;  %v3999_v0 = vcombine.low %v5399_v53, %v5431_v57  ;;  %v4449_v40 = vld [vmem:[%s6149_s3 + $0x218] ss:$8 sps:$4 sm:$0xff]   ;;  %v4455_v41 = vld [vmem:[%s6149_s3 + $0x194] ss:$8 sps:$4 sm:$0xff]  }
 0x1c5   : > { %v1285_v8 = vmax.f32 %v5356_v61, %v4305_v9  ;;  %v1253_v15 = vsel %vm1245_vm7, %v4304_v34, %v4305_v9  ;;  %v1283_v10 = vmax.f32 %v5362_v60, %v4300_v31  ;;  %v1252_v7 = vsel %vm1245_vm7, %v4299_v42, %v4300_v31  ;;  %2325 = vmatprep.subr.bf16.mxu0 %v4422_v54  ;;  %v1351_v60 = vld [vmem:[#allocation2 + $0x38] sm:$0x33]  ;;  %v5537_v56 = vld [vmem:[#allocation2] sm:$0x88]  ;;  %v4458_v34 = vld [vmem:[%s6149_s3 + $0x20c] ss:$8 sps:$4 sm:$0xff]  }
 0x1c6   : > { %1342 = vst.msk [vmem:[#allocation2 + $0x28] sm:$0xff] %vm5377_vm9, %v4190_v1  ;;  %v1284_v21 = vmax.f32 %v5354_v30, %v1253_v15  ;;  %v1282_v23 = vmax.f32 %v5360_v2, %v1252_v7  ;;  %v3808_v61 = vcombine.low %v1382_v62, %v5399_v53  ;;  %v3945_v31 = vcombine.high %v5537_v56, %v5399_v53  ;;  %v3943_v1 = vld [vmem:[%s6149_s3 + $0x298] sm:$0xff]  ;;  %v4462_v7 = vld [vmem:[%s6149_s3 + $0x184] ss:$8 sps:$4 sm:$0xff]  }
 0x1c7   : > { %v5450_v22 = vld [vmem:[#allocation2 + $0x18] sm:$0xff] }
 0x1c8   : > { %v4192_v26 = vpack.c.bf16 %v1285_v8, %v1284_v21  ;;  %v4191_v30 = vpack.c.bf16 %v1283_v10, %v1282_v23  ;;  %2326 = vmatpush1.bf16.msra.mxu0 %v4420_v35  ;;  %v5458_v2 = vcombine.high %v5431_v57, %v5450_v22  ;;  %v5465_v5 = vcombine.low %v5431_v57, %v5450_v22  ;;  %v4456_v8 = vld [vmem:[%s6149_s3 + $0x208] ss:$8 sps:$4 sm:$0xff]   ;;  %v4466_v21 = vld [vmem:[%s6149_s3 + $0x1fc] ss:$8 sps:$4 sm:$0xff]  }
 0x1c9   : > { %2327 = vmatprep.subr.bf16.mxu0 %v4429_v12  ;;  %v1435_v32 = vrot.slane %v3808_v61, 1  ;;  %v2185_v10 = vrot.slane %v3945_v31, 3  ;;  %v3973_v23 = vcombine.high %v3943_v1, %v3943_v1  ;;  %v4486_v31 = vld [vmem:[%s6149_s3 + $0x1e0] ss:$8 sps:$4 sm:$0xff]  }
 0x1ca   : > { %v1352_v63 = vsel %vm1350_vm1, %v4192_v26, %v1351_v60  ;;  %1343 = vst.msk [vmem:[#allocation2 + $0x30] sm:$0xff] %vm5377_vm9, %v4191_v30  ;;  %3869 = vmatprep.mubr.msk.bf16.mxu0 %vm1558_vm10, %v5458_v2  ;;  %v1436_v33 = vrot.slane %v5465_v5, 1  ;;  %v1439_v52 = vrot.slane %v5458_v2, 1  ;;  %v5476_v13 = vld [vmem:[#allocation2 + $0x20] sm:$0xff]  ;;  %v2186_v35 = vrot.slane %v5458_v2, 3 }
 0x1cb   : > { %1353 = vst [vmem:[#allocation2 + $0x38] sm:$0x33] %v1352_v63  ;;  %1831 = vmatmul.mubr.bf16.gmra.mxu0 %v5465_v5  ;;  %v4002_v50 = vcombine.high %v5450_v22, %v5476_v13  ;;  %v4001_v14 = vcombine.low %v5450_v22, %v5476_v13  ;;  %v4460_v60 = vld [vmem:[%s6149_s3 + $0x180] ss:$8 sps:$4 sm:$0xff]   ;;  %v4469_v30 = vld [vmem:[%s6149_s3 + $0x174] ss:$8 sps:$4 sm:$0xff]  }
 0x1cc   : > { %2328 = vmatpush1.bf16.msra.mxu0 %v4427_v27  ;;  %v1440_v47 = vsel %vm651_vm4, %v1438_v25, %v1439_v52  ;;  %v1437_v45 = vsel %vm651_vm4, %v1435_v32, %v1436_v33  ;;  %v2187_v61 = vsel %vm2181_vm3, %v2185_v10, %v2186_v35  ;;  %v4464_v26 = vld [vmem:[%s6149_s3 + $0x1f8] ss:$8 sps:$4 sm:$0xff]   ;;  %v3972_v27 = vcombine.low %v3943_v1, %v3943_v1  ;;  %v4474_v32 = vld [vmem:[%s6149_s3 + $0x164] ss:$8 sps:$4 sm:$0xff]  }
 0x1cd   : > { %3838 = vmatprep.mubr.msk.bf16.mxu1 %vm1558_vm10, %v1440_v47  ;;  %2329 = vmatprep.subr.bf16.mxu0 %v4436_v28  ;;  %v5495_v39 = vld [vmem:[#allocation2 + $0x28] sm:$0xff]  ;;  %v2321_v28 = vand.u32 %v3973_v23, %v5086_v37  ;;  %v4467_v63 = vld [vmem:[%s6149_s3 + $0x170] ss:$8 sps:$4 sm:$0xff]   ;;  %v1894_v10 = vrot.slane %v5465_v5, 2 }
 0x1ce   : > { %1613 = vmatmul.mubr.bf16.vlgmr.msra.gmra.mxu1 %v1437_v45  ;;  %v5502_v44 = vcombine.high %v5476_v13, %v5495_v39  ;;  %v5506_v43 = vcombine.low %v5476_v13, %v5495_v39  ;;  %v4477_v47 = vld [vmem:[%s6149_s3 + $0x28c] ss:$8 sps:$4 sm:$0xff]  }
 0x1cf   : > { %2035 = vmatpush1.bf16.msra.mxu1 %v4431_v36  ;;  %v3892_v45 = vld [vmem:[%s6149_s3 + $0x1f0] sm:$0xff] }
 0x1d0   : > { %2330 = vmatpush1.bf16.msra.mxu0 %v4434_v11  ;;  %2036 = vmatprep.subr.bf16.mxu1 %v4439_v51  ;;  %v1443_v38 = vrot.slane %v5502_v44, 1  ;;  %v1441_v4 = vrot.slane %v5506_v43, 1  ;;  %v1897_v11 = vrot.slane %v5458_v2, 2  ;;  %v4472_v51 = vld [vmem:[%s6149_s3 + $0x160] ss:$8 sps:$4 sm:$0xff]   ;;  %v2188_v1 = vrot.slane %v5506_v43, 3 }
 0x1d1   : > { %3870 = vmatprep.mubr.msk.bf16.mxu0 %vm1558_vm10, %v5502_v44  ;;  %2331 = vmatprep.subr.bf16.mxu0 %v4443_v18  ;;  %v1360_v49 = vld [vmem:[#allocation2 + $0x30] sm:$0x33]  ;;  %v1899_v2 = vrot.slane %v5506_v43, 2 }
 0x1d2   : > { %v1383_v59 = vld [vmem:[#allocation2 + $0x30] sm:$0x77]  ;;  %v1444_v29 = vsel %vm651_vm4, %v1439_v52, %v1443_v38  ;;  %v3845_v46 = vcombine.high %v1360_v49, %v1360_v49  ;;  %v1442_v54 = vsel %vm651_vm4, %v1436_v33, %v1441_v4  ;;  %v3844_v15 = vcombine.low %v1360_v49, %v1360_v49  ;;  %v5586_v33 = vld [vmem:[#allocation2] sm:$0xcc] }
 0x1d3   : > { %v3815_v3 = vcombine.high %v1383_v59, %v1383_v59  ;;  %2037 = vmatpush1.bf16.msra.mxu1 %v4437_v20  ;;  %1841 = vmatmul.mubr.bf16.gmra.mxu0 %v5506_v43  ;;  %v5539_v9 = vld [vmem:[#allocation2 + $0x30] sm:$0xff]  ;;  %v3814_v42 = vcombine.low %v1383_v59, %v1383_v59  ;;  %v2318_v52 = vand.u32 %v3972_v27, %v5086_v37 }
 0x1d4   : > { %2332 = vmatpush1.bf16.msra.mxu0 %v4441_v17  ;;  %3839 = vmatprep.mubr.msk.bf16.mxu1 %vm1558_vm10, %v1444_v29  ;;  %v4003_v6 = vcombine.low %v5495_v39, %v5539_v9  ;;  %v3894_v36 = vcombine.high %v5586_v33, %v5399_v53  ;;  %v4475_v18 = vld [vmem:[%s6149_s3 + $0x288] ss:$8 sps:$4 sm:$0xff]   ;;  %v4480_v17 = vld [vmem:[%s6149_s3 + $0x154] ss:$8 sps:$4 sm:$0xff]   ;;  %v3917_v59 = vcombine.low %v3892_v45, %v3892_v45 }
 0x1d5   : > { %v1447_v58 = vrot.slane %v3815_v3, 1  ;;  %2038 = vmatprep.subr.bf16.mxu1 %v4447_v48  ;;  %3871 = vmatprep.mubr.msk.bf16.mxu0 %vm1558_vm10, %v3845_v46  ;;  %v1445_v12 = vrot.slane %v3814_v42, 1  ;;  %v4478_v49 = vld [vmem:[%s6149_s3 + $0x150] ss:$8 sps:$4 sm:$0xff]   ;;  %v3944_v29 = vcombine.low %v5537_v56, %v5399_v53  ;;  %v2183_v3 = vrot.slane %v5465_v5, 3 }
 0x1d6   : > { %1623 = vmatmul.mubr.bf16.gmra.mxu1 %v1442_v54  ;;  %2333 = vmatprep.subr.bf16.mxu0 %v4451_v19  ;;  %v1896_v20 = vrot.slane %v3894_v36, 2  ;;  %v4481_v46 = vld [vmem:[%s6149_s3 + $0x278] ss:$8 sps:$4 sm:$0xff]   ;;  %v2190_v54 = vrot.slane %v5502_v44, 3  ;;  %v4498_v5 = vld [vmem:[%s6149_s3 + $0x304] ss:$8 sps:$4 sm:$0xff]   ;;  %v3896_v27 = vcombine.high %v5539_v9, %v5539_v9  ;;  %v1900_v36 = vsel %vm945_vm2, %v1894_v10, %v1899_v2 }
 0x1d7   : > { %v1448_v62 = vsel %vm651_vm4, %v1443_v38, %v1447_v58  ;;  %2039 = vmatpush1.bf16.msra.mxu1 %v4445_v55  ;;  %v1446_v25 = vsel %vm651_vm4, %v1441_v4, %v1445_v12  ;;  %v3918_v38 = vcombine.high %v3892_v45, %v3892_v45  ;;  %v4483_v4 = vld [vmem:[%s6149_s3 + $0x27c] ss:$8 sps:$4 sm:$0xff]   ;;  %v2029_v55 = vand.u32 %v3917_v59, %v5086_v37  ;;  %v4504_v45 = vld [vmem:[%s6149_s3 + $0x2e0] ss:$8 sps:$4 sm:$0xff]   ;;  %v4514_v59 = vld [vmem:[%s6149_s3 + $0x2b0] ss:$8 sps:$4 sm:$0xff]  }
 0x1d8   : > { %3840 = vmatprep.mubr.msk.bf16.mxu1 %vm1558_vm10, %v1448_v62  ;;  %2334 = vmatpush1.bf16.msra.mxu0 %v4449_v40  ;;  %v1898_v48 = vsel %vm945_vm2, %v1896_v20, %v1897_v11  ;;  %v2182_v40 = vrot.slane %v3944_v29, 3  ;;  %v4491_v62 = vld [vmem:[%s6149_s3 + $0x1d4] ss:$8 sps:$4 sm:$0xff]   ;;  %v3895_v43 = vcombine.low %v5539_v9, %v5539_v9  ;;  %v4513_v20 = vld [vmem:[%s6149_s3 + $0x2c4] ss:$8 sps:$4 sm:$0xff]  }
 0x1d9   : > { %2040 = vmatprep.subr.bf16.mxu1 %v4455_v41  ;;  %2335 = vmatprep.subr.bf16.mxu0 %v4458_v34  ;;  %v2032_v19 = vand.u32 %v3918_v38, %v5086_v37  ;;  %v2126_v41 = vld [vmem:[#allocation2 + $0x38] sm:$0x11]  ;;  %v2191_v34 = vsel %vm2181_vm3, %v2186_v35, %v2190_v54  ;;  %v4519_v29 = vld [vmem:[%s6149_s3 + $0x2a4] ss:$8 sps:$4 sm:$0xff]  }
 0x1da   : > { %v2184_v56 = vsel %vm2181_vm3, %v2182_v40, %v2183_v3  ;;  %v3951_v42 = vcombine.high %v5539_v9, %v2126_v41  ;;  %v4489_v35 = vld [vmem:[%s6149_s3 + $0x1d0] ss:$8 sps:$4 sm:$0xff]   ;;  %v4524_v40 = vld [vmem:[%s6149_s3 + $0x334] ss:$8 sps:$4 sm:$0xff]  }
 0x1db   : > { %2041 = vmatpush1.bf16.msra.mxu1 %v4453_v16  ;;  %1851 = vmatmul.mubr.bf16.gmra.mxu0 %v3844_v15  ;;  %v3893_v16 = vcombine.low %v5586_v33, %v5399_v53  ;;  %v4495_v15 = vld [vmem:[%s6149_s3 + $0x314] ss:$8 sps:$4 sm:$0xff]   ;;  %v1905_v33 = vrot.slane %v3896_v27, 2 }
 0x1dc   : > { %2336 = vmatpush1.bf16.msra.mxu0 %v4456_v8  ;;  %3974 = vmatprep.mubr.msk.bf16.mxu0 %vm1558_vm10, %v2187_v61  ;;  %v2194_v8 = vrot.slane %v3951_v42, 3 }
 0x1dd   : > { %2042 = vmatprep.subr.bf16.mxu1 %v4462_v7  ;;  %2337 = vmatprep.subr.bf16.mxu0 %v4466_v21  ;;  %v2189_v7 = vsel %vm2181_vm3, %v2183_v3, %v2188_v1  ;;  %v3950_v21 = vcombine.low %v5539_v9, %v2126_v41  ;;  %v1893_v61 = vrot.slane %v3893_v16, 2  ;;  %v4004_v41 = vcombine.high %v5495_v39, %v5539_v9 }
 0x1de   : > { %1633 = vmatmul.mubr.bf16.gmra.mxu1 %v1446_v25  ;;  %v2195_v23 = vsel %vm2181_vm3, %v2190_v54, %v2194_v8  ;;  %v4496_v25 = vld [vmem:[%s6149_s3 + $0x300] ss:$8 sps:$4 sm:$0xff]  }
 0x1df   : > { %2043 = vmatpush1.bf16.msra.mxu1 %v4460_v60  ;;  %3841 = vmatprep.mubr.msk.bf16.mxu1 %vm1558_vm10, %v1447_v58  ;;  %v4488_v58 = vld [vmem:[%s6149_s3 + $0x1e4] ss:$8 sps:$4 sm:$0xff]   ;;  %v4493_v60 = vld [vmem:[%s6149_s3 + $0x310] ss:$8 sps:$4 sm:$0xff]  }
 0x1e0   : > { %2338 = vmatpush1.bf16.msra.mxu0 %v4464_v26  ;;  %2044 = vmatprep.subr.bf16.mxu1 %v4469_v30  ;;  %v2192_v30 = vrot.slane %v3950_v21, 3 }
 0x1e1   : > { %2349 = vmatprep.subr.bf16.mxu0 %v2321_v28  ;;  %v4502_v28 = vld [vmem:[%s6149_s3 + $0x2f4] ss:$8 sps:$4 sm:$0xff]  }
 0x1e3   : > { %2045 = vmatpush1.bf16.msra.mxu1 %v4467_v63  ;;  %v2193_v63 = vsel %vm2181_vm3, %v2188_v1, %v2192_v30 }
 0x1e4   : > { %2350 = vmatpush2.bf16.msra.mxu0 %v2318_v52  ;;  %2046 = vmatprep.subr.bf16.mxu1 %v4474_v32  ;;  %v4500_v52 = vld [vmem:[%s6149_s3 + $0x2f0] ss:$8 sps:$4 sm:$0xff]   ;;  %v4506_v32 = vld [vmem:[%s6149_s3 + $0x2e4] ss:$8 sps:$4 sm:$0xff]  }
 0x1e5   : > { %2351 = vmatprep.subr.bf16.mxu0 %v4477_v47 }
 0x1e6   : > { %1643 = vmatmul.mubr.bf16.gmra.mxu1 %v1445_v12  ;;  %v1901_v12 = vrot.slane %v5502_v44, 2  ;;  %v1895_v44 = vsel %vm945_vm2, %v1893_v61, %v1894_v10 }
 0x1e7   : > { %2047 = vmatpush1.bf16.msra.mxu1 %v4472_v51  ;;  %3919 = vmatprep.mubr.msk.bf16.mxu1 %vm1558_vm10, %v1898_v48  ;;  %v1903_v51 = vrot.slane %v3895_v43, 2  ;;  %v4516_v48 = vld [vmem:[%s6149_s3 + $0x2b4] ss:$8 sps:$4 sm:$0xff]  }
 0x1e8   : > { %2352 = vmatpush2.bf16.msra.mxu0 %v4475_v18  ;;  %2048 = vmatprep.subr.bf16.mxu1 %v4480_v17  ;;  %v1902_v26 = vsel %vm945_vm2, %v1897_v11, %v1901_v12  ;;  %v1906_v47 = vsel %vm945_vm2, %v1901_v12, %v1905_v33  ;;  %v4510_v11 = vld [vmem:[%s6149_s3 + $0x2d4] ss:$8 sps:$4 sm:$0xff]   ;;  %v4508_v18 = vld [vmem:[%s6149_s3 + $0x2d0] ss:$8 sps:$4 sm:$0xff]   ;;  %v6180_v17 = vmov 0  }
 0x1e9   : > { %2353 = vmatprep.subr.bf16.mxu0 %v4483_v4  ;;  %v1904_v38 = vsel %vm945_vm2, %v1899_v2, %v1903_v51  ;;  %v4511_v4 = vld [vmem:[%s6149_s3 + $0x2c0] ss:$8 sps:$4 sm:$0xff]  }
 0x1eb   : > { %2049 = vmatpush1.bf16.msra.mxu1 %v4478_v49  ;;  %v3998_v49 = vld [vmem:[%s6149_s3 + $0x340] sm:$0xff] }
 0x1ec   : > { %2354 = vmatpush2.bf16.msra.mxu0 %v4481_v46  ;;  %2060 = vmatprep.subr.bf16.mxu1 %v2032_v19  ;;  %v4028_v46 = vcombine.high %v3998_v49, %v3998_v49  ;;  %v4517_v19 = vld [vmem:[%s6149_s3 + $0x2a0] ss:$8 sps:$4 sm:$0xff]   ;;  %v4027_v3 = vcombine.low %v3998_v49, %v3998_v49 }
 0x1ee   : > { %v2564_v54 = vand.u32 %v4027_v3, %v5086_v37 }
 0x1ef   : > { %2061 = vmatpush2.bf16.msra.mxu1 %v2029_v55  ;;  %2356 = vmatmul.mubr.bf16.vlgmr.msra.gmra.mxu0 %v2184_v56  ;;  %v2567_v55 = vand.u32 %v4028_v46, %v5086_v37  ;;  %v4525_v37 = vld [vmem:[%s6149_s3 + $0x320] ss:$8 sps:$4 sm:$0xff]   ;;  %v2408_v56 = vld [vmem:[#allocation2 + $0x38] sm:$0x33] }
 0x1f0   : > { %3975 = vmatprep.mubr.msk.bf16.mxu0 %vm1558_vm10, %v2191_v34  ;;  %2062 = vmatprep.subr.bf16.mxu1 %v4488_v58  ;;  %v4527_v58 = vld [vmem:[%s6149_s3 + $0x324] ss:$8 sps:$4 sm:$0xff]   ;;  %v4006_v34 = vcombine.high %v2408_v56, %v2408_v56  ;;  %v4005_v53 = vcombine.low %v2408_v56, %v2408_v56 }
 0x1f3   : > { %2063 = vmatpush2.bf16.msra.mxu1 %v4486_v31 }
 0x1f4   : > { %2064 = vmatprep.subr.bf16.mxu1 %v4491_v62 }
 0x1f7   : > { %2065 = vmatpush2.bf16.msra.mxu1 %v4489_v35  ;;  %2366 = vmatmul.mubr.bf16.gmra.mxu0 %v2189_v7 }
 0x1f8   : > { %3976 = vmatprep.mubr.msk.bf16.mxu0 %vm1558_vm10, %v2195_v23  ;;  %2569 = vmatprep.subr.bf16.mxu1 %v4495_v15 }
 0x1fa   : > { %2067 = vmatmul.mubr.bf16.vlgmr.msra.gmra.mxu1 %v1895_v44 }
 0x1fb   : > { %3920 = vmatprep.mubr.msk.bf16.mxu1 %vm1558_vm10, %v1902_v26  ;;  %2570 = vmatpush1.bf16.msra.mxu1 %v4493_v60 }
 0x1fc   : > { %2571 = vmatprep.subr.bf16.mxu1 %v4498_v5 }
 0x1ff   : > { %2376 = vmatmul.mubr.bf16.gmra.mxu0 %v2193_v63  ;;  %2572 = vmatpush1.bf16.msra.mxu1 %v4496_v25 }
 0x200   : > { %3977 = vmatprep.mubr.msk.bf16.mxu0 %vm1558_vm10, %v2194_v8  ;;  %2573 = vmatprep.subr.bf16.mxu1 %v4502_v28 }
 0x202   : > { %2077 = vmatmul.mubr.bf16.gmra.mxu1 %v1900_v36 }
 0x203   : > { %3921 = vmatprep.mubr.msk.bf16.mxu1 %vm1558_vm10, %v1906_v47  ;;  %2574 = vmatpush1.bf16.msra.mxu1 %v4500_v52 }
 0x204   : > { %2575 = vmatprep.subr.bf16.mxu1 %v4506_v32 }
 0x207   : > { %2386 = vmatmul.mubr.bf16.gmra.mxu0 %v2192_v30  ;;  %2576 = vmatpush1.bf16.msra.mxu1 %v4504_v45 }
 0x208   : > { %2577 = vmatprep.subr.bf16.mxu1 %v4510_v11  ;;  %2823 = vmatprep.mubr.bf16.mxu0 %v6180_v17 }
 0x20a   : > { %2087 = vmatmul.mubr.bf16.gmra.mxu1 %v1904_v38 }
 0x20b   : > { %3922 = vmatprep.mubr.msk.bf16.mxu1 %vm1558_vm10, %v1905_v33  ;;  %2578 = vmatpush1.bf16.msra.mxu1 %v4508_v18 }
 0x20c   : > { %2579 = vmatprep.subr.bf16.mxu1 %v4513_v20 }
 0x20f   : > { %2580 = vmatpush1.bf16.msra.mxu1 %v4511_v4 }
 0x210   : > { %2581 = vmatprep.subr.bf16.mxu1 %v4516_v48 }
 0x212   : > { %2097 = vmatmul.mubr.bf16.gmra.mxu1 %v1903_v51 }
 0x213   : > { %2582 = vmatpush1.bf16.msra.mxu1 %v4514_v59  ;;  %4029 = vmatprep.mubr.msk.bf16.mxu1 %vm1558_vm10, %v4000_v24  ;;  %v4522_v24 = vld [vmem:[%s6149_s3 + $0x330] ss:$8 sps:$4 sm:$0xff]  }
 0x214   : > { %2583 = vmatprep.subr.bf16.mxu1 %v4519_v29 }
 0x217   : > { %2584 = vmatpush1.bf16.msra.mxu1 %v4517_v19 }
 0x218   : > { %2595 = vmatprep.subr.bf16.mxu1 %v2567_v55 }
 0x21b   : > { %2596 = vmatpush2.bf16.msra.mxu1 %v2564_v54 }
 0x21c   : > { %2597 = vmatprep.subr.bf16.mxu1 %v4524_v40 }
 0x21f   : > { %2598 = vmatpush2.bf16.msra.mxu1 %v4522_v24 }
 0x220   : > { %2599 = vmatprep.subr.bf16.mxu1 %v4527_v58 }
 0x223   : > { %2600 = vmatpush2.bf16.msra.mxu1 %v4525_v37 }
 0x224   : > { %2948 = vmatprep.subr.bf16.mxu1 %v6180_v17 }
 0x226   : > { %2602 = vmatmul.mubr.bf16.vlgmr.msra.gmra.mxu1 %v3999_v0 }
 0x227   : > { %4030 = vmatprep.mubr.msk.bf16.mxu1 %vm1558_vm10, %v4002_v50 }
 0x22e   : > { %2612 = vmatmul.mubr.bf16.gmra.mxu1 %v4001_v14 }
 0x22f   : > { %4031 = vmatprep.mubr.msk.bf16.mxu1 %vm1558_vm10, %v4004_v41 }
 0x236   : > { %2622 = vmatmul.mubr.bf16.gmra.mxu1 %v4003_v6 }
 0x237   : > { %4032 = vmatprep.mubr.msk.bf16.mxu1 %vm1558_vm10, %v4006_v34 }
 0x23e   : > { %2632 = vmatmul.mubr.bf16.gmra.mxu1 %v4005_v53 }
 0x283   : > { %v1822_v57 = vpop.f32.mrf.mxu0 }
 0x285   : > { %v1824_v0 = vpop.f32.mrf.mxu0 }
 0x287   : > { %v1826_v50 = vpop.f32.mrf.mxu0 }
 0x289   : > { %v1828_v31 = vpop.f32.mrf.mxu0 }
 0x28b   : > { %v1832_v42 = vpop.f32.mrf.mxu0 }
 0x28d   : > { %v1834_v62 = vpop.f32.mrf.mxu0 }
 0x28e   : > { %v1614_v22 = vpop.f32.mrf.mxu1 }
 0x28f   : > { %v1823_v13 = vadd.f32 %v1822_v57, %v1614_v22  ;;  %v1836_v14 = vpop.f32.mrf.mxu0 }
 0x290   : > { %v1616_v1 = vpop.f32.mrf.mxu1 }
 0x291   : > { %v1825_v16 = vadd.f32 %v1824_v0, %v1616_v1  ;;  %v1838_v35 = vpop.f32.mrf.mxu0 }
 0x292   : > { %v1618_v8 = vpop.f32.mrf.mxu1 }
 0x293   : > { %v1827_v15 = vadd.f32 %v1826_v50, %v1618_v8  ;;  %v1842_v39 = vpop.f32.mrf.mxu0 }
 0x294   : > { %v1620_v9 = vpop.f32.mrf.mxu1 }
 0x295   : > { %v1829_v6 = vadd.f32 %v1828_v31, %v1620_v9  ;;  %v1844_v10 = vpop.f32.mrf.mxu0 }
 0x296   : > { %v1624_v7 = vpop.f32.mrf.mxu1 }
 0x297   : > { %v1833_v12 = vadd.f32 %v1832_v42, %v1624_v7  ;;  %v1846_v21 = vpop.f32.mrf.mxu0 }
 0x298   : > { %v1626_v23 = vpop.f32.mrf.mxu1 }
 0x299   : > { %v1835_v61 = vadd.f32 %v1834_v62, %v1626_v23  ;;  %v1848_v60 = vpop.f32.mrf.mxu0 }
 0x29a   : > { %v1628_v5 = vpop.f32.mrf.mxu1 }
 0x29b   : > { %v1837_v44 = vadd.f32 %v1836_v14, %v1628_v5  ;;  %v1852_v26 = vpop.f32.mrf.mxu0 }
 0x29c   : > { %v1630_v30 = vpop.f32.mrf.mxu1 }
 0x29d   : > { %v1839_v27 = vadd.f32 %v1838_v35, %v1630_v30  ;;  %v1854_v25 = vpop.f32.mrf.mxu0 }
 0x29e   : > { %v1634_v28 = vpop.f32.mrf.mxu1 }
 0x29f   : > { %v1843_v2 = vadd.f32 %v1842_v39, %v1634_v28  ;;  %v1856_v63 = vpop.f32.mrf.mxu0 }
 0x2a0   : > { %v1636_v33 = vpop.f32.mrf.mxu1 }
 0x2a1   : > { %v1845_v52 = vadd.f32 %v1844_v10, %v1636_v33  ;;  %v1857_v32 = vpop.f32.mrf.mxu0 }
 0x2a2   : > { %v1638_v36 = vpop.f32.mrf.mxu1 }
 0x2a3   : > { %v1847_v43 = vadd.f32 %v1846_v21, %v1638_v36 }
 0x2a4   : > { %v1640_v47 = vpop.f32.mrf.mxu1 }
 0x2a5   : > { %v5761_v45 = vadd.f32 %v1848_v60, %v1640_v47 }
 0x2a6   : > { %v1644_v11 = vpop.f32.mrf.mxu1 }
 0x2a7   : > { %v5763_v51 = vadd.f32 %v1852_v26, %v1644_v11 }
 0x2a8   : > { %v1646_v18 = vpop.f32.mrf.mxu1 }
 0x2a9   : > { %v5765_v20 = vadd.f32 %v1854_v25, %v1646_v18  ;;  %v6181_v18 = vld [vmem:[#allocation8_spill] sm:$0xff] }
 0x2aa   : > { %v1648_v38 = vpop.f32.mrf.mxu1 }
 0x2ab   : > { %v6182_v38 = vsub.s32 0, %v6181_v18 }
 0x2ac   : > { %v1649_v4 = vpop.f32.mrf.mxu1 }
 0x2af   : > { %v2357_v48 = vpop.f32.mrf.mxu0 }
 0x2b1   : > { %v2359_v49 = vpop.f32.mrf.mxu0 }
 0x2b3   : > { %v2361_v59 = vpop.f32.mrf.mxu0 }
 0x2b5   : > { %v2363_v29 = vpop.f32.mrf.mxu0 }
 0x2b7   : > { %v2367_v46 = vpop.f32.mrf.mxu0 }
 0x2b9   : > { %v2369_v19 = vpop.f32.mrf.mxu0 }
 0x2ba   : > { %v2068_v3 = vpop.f32.mrf.mxu1 }
 0x2bb   : > { %v2105_v55 = vadd.f32 %v2068_v3, %v1823_v13  ;;  %v2371_v54 = vpop.f32.mrf.mxu0 }
 0x2bc   : > { %v2070_v40 = vpop.f32.mrf.mxu1 }
 0x2bd   : > { %v2106_v24 = vadd.f32 %v2070_v40, %v1825_v16  ;;  %v2373_v58 = vpop.f32.mrf.mxu0  ;;  %v2394_v37 = vadd.f32 %v2357_v48, %v2105_v55 }
 0x2be   : > { %v2072_v41 = vpop.f32.mrf.mxu1 }
 0x2bf   : > { %v2107_v56 = vadd.f32 %v2072_v41, %v1827_v15  ;;  %v2377_v34 = vpop.f32.mrf.mxu0  ;;  %v2395_v53 = vadd.f32 %v2359_v49, %v2106_v24 }
 0x2c0   : > { %v2074_v57 = vpop.f32.mrf.mxu1 }
 0x2c1   : > { %v2108_v0 = vadd.f32 %v2074_v57, %v1829_v6  ;;  %v2379_v50 = vpop.f32.mrf.mxu0  ;;  %v2396_v31 = vadd.f32 %v2361_v59, %v2107_v56 }
 0x2c2   : > { %v2078_v42 = vpop.f32.mrf.mxu1 }
 0x2c3   : > { %v2109_v62 = vadd.f32 %v2078_v42, %v1833_v12  ;;  %v2381_v22 = vpop.f32.mrf.mxu0  ;;  %v2397_v14 = vadd.f32 %v2363_v29, %v2108_v0 }
 0x2c4   : > { %v2080_v1 = vpop.f32.mrf.mxu1 }
 0x2c5   : > { %v2110_v35 = vadd.f32 %v2080_v1, %v1835_v61  ;;  %v5767_v13 = vpop.f32.mrf.mxu0  ;;  %v2398_v8 = vadd.f32 %v2367_v46, %v2109_v62 }
 0x2c6   : > { %v2082_v16 = vpop.f32.mrf.mxu1 }
 0x2c7   : > { %v2111_v39 = vadd.f32 %v2082_v16, %v1837_v44  ;;  %v5769_v9 = vpop.f32.mrf.mxu0  ;;  %v2399_v15 = vadd.f32 %v2369_v19, %v2110_v35 }
 0x2c8   : > { %v2084_v10 = vpop.f32.mrf.mxu1 }
 0x2c9   : > { %v2112_v7 = vadd.f32 %v2084_v10, %v1839_v27  ;;  %v5771_v21 = vpop.f32.mrf.mxu0  ;;  %v2400_v6 = vadd.f32 %v2371_v54, %v2111_v39 }
 0x2ca   : > { %v2088_v23 = vpop.f32.mrf.mxu1 }
 0x2cb   : > { %v2113_v60 = vadd.f32 %v2088_v23, %v1843_v2  ;;  %v2391_v12 = vpop.f32.mrf.mxu0  ;;  %v2401_v5 = vadd.f32 %v2373_v58, %v2112_v7  ;;  %v2654_v2 = vld [vmem:[%s6150_s4] sm:$0x3] }
 0x2cc   : > { %v2090_v26 = vpop.f32.mrf.mxu1  ;;  %v5780_v4 = vrot.slane %v2654_v2, %v6182_v38 }
 0x2cd   : > { %v2114_v30 = vadd.f32 %v2090_v26, %v1845_v52  ;;  %v2392_v61 = vpop.f32.mrf.mxu0  ;;  %v2402_v25 = vadd.f32 %v2377_v34, %v2113_v60 }
 0x2ce   : > { %v2092_v28 = vpop.f32.mrf.mxu1 }
 0x2cf   : > { %v2115_v63 = vadd.f32 %v2092_v28, %v1847_v43  ;;  %v2403_v33 = vadd.f32 %v2379_v50, %v2114_v30  ;;  %v6183_v43 = vsub.s32 1, %v6181_v18 }
 0x2d0   : > { %v2094_v44 = vpop.f32.mrf.mxu1 }
 0x2d1   : > { %v5773_v32 = vadd.f32 %v2381_v22, %v2115_v63  ;;  %v5784_v49 = vrot.slane %v2654_v2, %v6183_v43  ;;  %v2116_v10 = vadd.f32 %v2094_v44, %v5761_v45 }
 0x2d2   : > { %v2098_v36 = vpop.f32.mrf.mxu1 }
 0x2d3   : > { %v2405_v18 = vadd.f32 %v5767_v13, %v2116_v10 }
 0x2d4   : > { %v2100_v47 = vpop.f32.mrf.mxu1 }
 0x2d6   : > { %v2102_v27 = vpop.f32.mrf.mxu1 }
 0x2d8   : > { %v2103_v11 = vpop.f32.mrf.mxu1 }
 0x2e6   : > { %v2603_v52 = vpop.f32.mrf.mxu1 }
 0x2e7   : > { %v2640_v48 = vadd.f32 %v2603_v52, %v2394_v37 }
 0x2e8   : > { %v2605_v59 = vpop.f32.mrf.mxu1 }
 0x2e9   : > { %v2666_v29 = vadd.f32 %v5780_v4, %v2640_v48  ;;  %v2641_v46 = vadd.f32 %v2605_v59, %v2395_v53  ;;  %v2118_v59 = vadd.f32 %v2100_v47, %v5765_v20 }
 0x2ea   : > { %v2607_v19 = vpop.f32.mrf.mxu1 }
 0x2eb   : > { %v2667_v3 = vadd.f32 %v5784_v49, %v2641_v46  ;;  %v2642_v55 = vadd.f32 %v2607_v19, %v2396_v31  ;;  %v2680_v54 = vmax.f32 %v2666_v29, 0.0 }
 0x2ec   : > { %v2609_v40 = vpop.f32.mrf.mxu1 }
 0x2ed   : > { %v2668_v24 = vadd.f32 %v5780_v4, %v2642_v55  ;;  %v2643_v58 = vadd.f32 %v2609_v40, %v2397_v14  ;;  %v2681_v41 = vmax.f32 %v2667_v3, 0.0  ;;  %v2709_v0 = vrot.slane %v2680_v54, 2 }
 0x2ee   : > { %v2613_v56 = vpop.f32.mrf.mxu1 }
 0x2ef   : > { %v2682_v37 = vmax.f32 %v2668_v24, 0.0  ;;  %v2669_v34 = vadd.f32 %v5784_v49, %v2643_v58  ;;  %v2644_v57 = vadd.f32 %v2613_v56, %v2398_v8  ;;  %v2712_v1 = vrot.slane %v2681_v41, 2 }
 0x2f0   : > { %v2615_v50 = vpop.f32.mrf.mxu1  ;;  %v2407_v56 = vadd.f32 %v5771_v21, %v2118_v59 }
 0x2f1   : > { %v2710_v42 = vrot.slane %v2682_v37, 2  ;;  %v2683_v62 = vmax.f32 %v2669_v34, 0.0  ;;  %v2670_v53 = vadd.f32 %v5780_v4, %v2644_v57  ;;  %v2645_v22 = vadd.f32 %v2615_v50, %v2399_v15 }
 0x2f2   : > { %v2617_v31 = vpop.f32.mrf.mxu1 }
 0x2f3   : > { %v2711_v35 = vsel %vm945_vm2, %v2709_v0, %v2710_v42  ;;  %v2713_v16 = vrot.slane %v2683_v62, 2  ;;  %v2684_v39 = vmax.f32 %v2670_v53, 0.0  ;;  %v2671_v14 = vadd.f32 %v5784_v49, %v2645_v22 }
 0x2f4   : > { %v2646_v7 = vadd.f32 %v2617_v31, %v2400_v6  ;;  %v2619_v23 = vpop.f32.mrf.mxu1  ;;  %v5794_v8 = vmax.f32 %v2680_v54, %v2711_v35  ;;  %v2117_v6 = vadd.f32 %v2098_v36, %v5763_v51 }
 0x2f5   : > { %v2715_v60 = vrot.slane %v2684_v39, 2  ;;  %v2685_v12 = vmax.f32 %v2671_v14, 0.0  ;;  %v2647_v26 = vadd.f32 %v2619_v23, %v2401_v5  ;;  %v2714_v30 = vsel %vm945_vm2, %v2712_v1, %v2713_v16 }
 0x2f6   : > { %v2672_v15 = vadd.f32 %v5780_v4, %v2646_v7  ;;  %v2623_v61 = vpop.f32.mrf.mxu1  ;;  %v5798_v28 = vmax.f32 %v2681_v41, %v2714_v30  ;;  %v2406_v58 = vadd.f32 %v5769_v9, %v2117_v6 }
 0x2f7   : > { %v2716_v63 = vsel %vm945_vm2, %v2710_v42, %v2715_v60  ;;  %v2717_v27 = vrot.slane %v2685_v12, 2  ;;  %v2673_v11 = vadd.f32 %v5784_v49, %v2647_v26  ;;  %v2648_v45 = vadd.f32 %v2623_v61, %v2402_v25 }
 0x2f8   : > { %v2686_v44 = vmax.f32 %v2672_v15, 0.0  ;;  %v2625_v2 = vpop.f32.mrf.mxu1  ;;  %v5804_v5 = vmax.f32 %v2682_v37, %v2716_v63 }
 0x2f9   : > { %v2687_v38 = vmax.f32 %v2673_v11, 0.0  ;;  %v2674_v52 = vadd.f32 %v5780_v4, %v2648_v45  ;;  %v2649_v48 = vadd.f32 %v2625_v2, %v2403_v33  ;;  %v2718_v43 = vsel %vm945_vm2, %v2713_v16, %v2717_v27 }
 0x2fa   : > { %v2719_v29 = vrot.slane %v2686_v44, 2  ;;  %v2627_v46 = vpop.f32.mrf.mxu1  ;;  %v5809_v19 = vmax.f32 %v2683_v62, %v2718_v43  ;;  %v2765_v51 = vpack.c.bf16 %v5804_v5, %v5794_v8  ;;  %v4538_v8 = vld [vmem:[%s6152_s6 + $0x80] sm:$0xff]   ;;  %v4539_v5 = vld [vmem:[%s6152_s6 + $0x28] sm:$0xff]  }
 0x2fb   : > { %v2721_v25 = vrot.slane %v2687_v38, 2  ;;  %v2688_v36 = vmax.f32 %v2674_v52, 0.0  ;;  %v2675_v13 = vadd.f32 %v5784_v49, %v2649_v48  ;;  %v2650_v3 = vadd.f32 %v2627_v46, %v5773_v32  ;;  %v4535_v46 = vld [vmem:[%s6152_s6 + $0x38] sm:$0xff]  }
 0x2fc   : > { %v2720_v55 = vsel %vm945_vm2, %v2715_v60, %v2719_v29  ;;  %v2629_v33 = vpop.f32.mrf.mxu1  ;;  %v2766_v54 = vpack.c.bf16 %v5809_v19, %v5798_v28  ;;  %v4536_v19 = vld [vmem:[%s6152_s6 + $0x88] sm:$0xff]   ;;  %2949 = vmatpush1.bf16.msra.mxu1 %v4535_v46  ;;  %v4569_v46 = vld [vmem:[%s6152_s6 + $0xa0] sm:$0xff]  }
 0x2fd   : > { %v2723_v20 = vrot.slane %v2688_v36, 2  ;;  %v2689_v47 = vmax.f32 %v2675_v13, 0.0  ;;  %v2676_v40 = vadd.f32 %v5780_v4, %v2650_v3  ;;  %v2651_v24 = vadd.f32 %v2629_v33, %v2405_v18  ;;  %2950 = vmatprep.subr.bf16.mxu1 %v6180_v17  ;;  %v4542_v13 = vld [vmem:[%s6152_s6 + $0x70] sm:$0xff]   ;;  %v4543_v3 = vld [vmem:[%s6152_s6 + $0x18] sm:$0xff]  }
 0x2fe   : > { %v2633_v41 = vpop.f32.mrf.mxu1  ;;  %v2722_v37 = vsel %vm945_vm2, %v2717_v27, %v2721_v25  ;;  %v2753_v34 = vmax.f32 %v2684_v39, %v2720_v55  ;;  %v4544_v55 = vld [vmem:[%s6152_s6 + $0x68] sm:$0xff]   ;;  %v4545_v33 = vld [vmem:[%s6152_s6 + $0x10] sm:$0xff]  }
 0x2ff   : > { %v2724_v32 = vsel %vm945_vm2, %v2719_v29, %v2723_v20  ;;  %v2725_v57 = vrot.slane %v2689_v47, 2  ;;  %v2690_v0 = vmax.f32 %v2676_v40, 0.0  ;;  %v2677_v50 = vadd.f32 %v5784_v49, %v2651_v24  ;;  %v4534_v29 = vld [vmem:[%s6151_s5] sm:$0x1f]   ;;  %v4550_v24 = vld [vmem:[%s6152_s6 + $0x50] sm:$0xff]  }
 0x300   : > { %v2652_v42 = vadd.f32 %v2633_v41, %v2406_v58  ;;  %v2635_v62 = vpop.f32.mrf.mxu1  ;;  %v2754_v53 = vmax.f32 %v2685_v12, %v2722_v37  ;;  %v2755_v22 = vmax.f32 %v2686_v44, %v2724_v32  ;;  %v4549_v40 = vld [vmem:[%s6152_s6] sm:$0xff]   ;;  %v4551_v58 = vld [vmem:[%s6152_s6 + $0x48] sm:$0xff]   ;;  %v6184_v41 = vmov 65535   ;;  %v4552_v32 = vld [vmem:[%s6152_s6 + $0x98] sm:$0xff]  }
 0x301   : > { %v2727_v1 = vrot.slane %v2690_v0, 2  ;;  %v2691_v31 = vmax.f32 %v2677_v50, 0.0  ;;  %v2653_v35 = vadd.f32 %v2635_v62, %v2407_v56  ;;  %v2726_v9 = vsel %vm945_vm2, %v2721_v25, %v2725_v57  ;;  %v4537_v25 = vld [vmem:[%s6152_s6 + $0x30] sm:$0xff]   ;;  %v4553_v50 = vld [vmem:[%s6152_s6 + $0x40] sm:$0xff]  }
 0x302   : > { %v2678_v21 = vadd.f32 %v5780_v4, %v2652_v42  ;;  %v2637_v16 = vpop.f32.mrf.mxu1  ;;  %v2756_v14 = vmax.f32 %v2687_v38, %v2726_v9  ;;  %v2767_v39 = vpack.c.bf16 %v2755_v22, %v2753_v34  ;;  %v2784_v38 = vsel %vm2782_vm5, 65535, %v6180_v17  ;;  %2951 = vmatpush1.bf16.msra.mxu1 %v4537_v25  ;;  %v4554_v42 = vld [vmem:[%s6152_s6 + $0x90] sm:$0xff]  }
 0x303   : > { %v2728_v10 = vsel %vm945_vm2, %v2723_v20, %v2727_v1  ;;  %v2729_v7 = vrot.slane %v2691_v31, 2  ;;  %v2679_v23 = vadd.f32 %v5784_v49, %v2653_v35  ;;  %2952 = vmatprep.subr.bf16.mxu1 %v6180_v17  ;;  %v4547_v20 = vld [vmem:[%s6152_s6 + $0x8] sm:$0xff]   ;;  %v2943_v56 = vsel %vm651_vm4, 4294967295, %v6184_v41  ;;  %v4570_v25 = vld [vmem:[%s6152_s6 + $0xf0] sm:$0xff]  }
 0x304   : > { %v2692_v60 = vmax.f32 %v2678_v21, 0.0  ;;  %v2638_v26 = vpop.f32.mrf.mxu1  ;;  %v2757_v30 = vmax.f32 %v2688_v36, %v2728_v10  ;;  %v2768_v12 = vpack.c.bf16 %v2756_v14, %v2754_v53  ;;  %v4541_v36 = vld [vmem:[%s6152_s6 + $0x20] sm:$0xff]   ;;  %v5907_v37 = vsel %vm2942_vm8, %v2943_v56, 0  ;;  %v4581_v41 = vld [vmem:[%s6152_s6 + $0x148] sm:$0xff]  }
 0x305   : > { %v2693_v15 = vmax.f32 %v2679_v23, 0.0  ;;  %v2730_v61 = vsel %vm945_vm2, %v2725_v57, %v2729_v7  ;;  %v2946_v34 = vand.u32 %v4551_v58, %v5907_v37  ;;  %v3084_v57 = vand.u32 %v4552_v32, %v5907_v37  ;;  %v4580_v58 = vld [vmem:[%s6152_s6 + $0x150] sm:$0xff]   ;;  %v4582_v56 = vld [vmem:[%s6152_s6 + $0x140] sm:$0xff]  }
 0x306   : > { %v2731_v28 = vrot.slane %v2692_v60, 2  ;;  %v2758_v63 = vmax.f32 %v2689_v47, %v2730_v61  ;;  %2953 = vmatpush1.bf16.msra.mxu1 %v4539_v5  ;;  %v4548_v47 = vld [vmem:[%s6152_s6 + $0x58] sm:$0xff]   ;;  %vm2938_vm4 = vcmask 252928  }
 0x307   : > { %v2733_v27 = vrot.slane %v2693_v15, 2  ;;  %2954 = vmatprep.subr.bf16.mxu1 %v6180_v17 }
 0x308   : > { %v2732_v4 = vsel %vm945_vm2, %v2727_v1, %v2731_v28  ;;  %v2761_v11 = vmax.f32 %v2692_v60, %v2731_v28 }
 0x309   : > { %v2762_v45 = vmax.f32 %v2693_v15, %v2733_v27  ;;  %v2734_v6 = vsel %vm945_vm2, %v2729_v7, %v2733_v27  ;;  %v2759_v44 = vmax.f32 %v2690_v0, %v2732_v4  ;;  %vm2778_vm2 = vcmask 400384   ;;  %v4555_v15 = vld [vmem:[%s6152_s6 + $0xd8] sm:$0xff]   ;;  %v4556_v27 = vld [vmem:[%s6152_s6 + $0x128] sm:$0xff]  }
 0x30a   : > { %v2771_v2 = vpack.c.bf16 %v2761_v11, %v2761_v11  ;;  %v2760_v49 = vmax.f32 %v2691_v31, %v2734_v6  ;;  %2955 = vmatpush1.bf16.msra.mxu1 %v4541_v36  ;;  %v4557_v11 = vld [vmem:[%s6152_s6 + $0xd0] sm:$0xff]   ;;  %v4558_v6 = vld [vmem:[%s6152_s6 + $0x120] sm:$0xff]  }
 0x30b   : > { %v2772_v18 = vpack.c.bf16 %v2762_v45, %v2762_v45  ;;  %v2769_v52 = vpack.c.bf16 %v2759_v44, %v2757_v30  ;;  %2956 = vmatprep.subr.bf16.mxu1 %v6180_v17  ;;  %v4559_v44 = vld [vmem:[%s6152_s6 + $0xc8] sm:$0xff]   ;;  %v4573_v36 = vld [vmem:[%s6152_s6 + $0xe0] sm:$0xff]  }
 0x30c   : > { %v2770_v48 = vpack.c.bf16 %v2760_v49, %v2758_v63  ;;  %v2786_v59 = vand.u32 %v2784_v38, %v2771_v2  ;;  %v4560_v2 = vld [vmem:[%s6152_s6 + $0x118] sm:$0xff]   ;;  %v4561_v49 = vld [vmem:[%s6152_s6 + $0xc0] sm:$0xff]  }
 0x30d   : > { %v2789_v43 = vand.u32 %v2784_v38, %v2772_v18  ;;  %v4562_v18 = vld [vmem:[%s6152_s6 + $0x110] sm:$0xff]   ;;  %v4563_v38 = vld [vmem:[%s6152_s6 + $0xb8] sm:$0xff]  }
 0x30e   : > { %2957 = vmatpush1.bf16.msra.mxu1 %v4543_v3  ;;  %v4575_v3 = vld [vmem:[%s6152_s6 + $0x178] sm:$0xff]  }
 0x30f   : > { %2799 = vmatprep.subr.bf16.mxu0 %v2789_v43  ;;  %2958 = vmatprep.subr.bf16.mxu1 %v6180_v17  ;;  %v4566_v43 = vld [vmem:[%s6152_s6 + $0x100] sm:$0xff]  }
 0x310   : > { %2800 = vmatpush1.bf16.msra.mxu0 %v2786_v59  ;;  %v4567_v59 = vld [vmem:[%s6152_s6 + $0xa8] sm:$0xff]  }
 0x311   : > { %2801 = vmatprep.subr.bf16.mxu0 %v2770_v48  ;;  %v4565_v48 = vld [vmem:[%s6152_s6 + $0xb0] sm:$0xff]  }
 0x312   : > { %2959 = vmatpush1.bf16.msra.mxu1 %v4545_v33 }
 0x313   : > { %2960 = vmatprep.subr.bf16.mxu1 %v6180_v17 }
 0x314   : > { %2802 = vmatpush1.bf16.msra.mxu0 %v2769_v52  ;;  %v4564_v52 = vld [vmem:[%s6152_s6 + $0x108] sm:$0xff]  }
 0x315   : > { %2803 = vmatprep.subr.bf16.mxu0 %v2768_v12 }
 0x316   : > { %2961 = vmatpush1.bf16.msra.mxu1 %v4547_v20  ;;  %v4576_v20 = vld [vmem:[%s6152_s6 + $0x170] sm:$0xff]  }
 0x317   : > { %2962 = vmatprep.subr.bf16.mxu1 %v6180_v17 }
 0x318   : > { %2804 = vmatpush1.bf16.msra.mxu0 %v2767_v39 }
 0x319   : > { %2805 = vmatprep.subr.bf16.mxu0 %v2766_v54  ;;  %v4546_v54 = vld [vmem:[%s6152_s6 + $0x60] sm:$0xff]  }
 0x31a   : > { %2963 = vmatpush1.bf16.msra.mxu1 %v4549_v40  ;;  %v4578_v40 = vld [vmem:[%s6152_s6 + $0x160] sm:$0xff]  }
 0x31b   : > { %2976 = vmatprep.subr.bf16.mxu1 %v6180_v17 }
 0x31c   : > { %2806 = vmatpush1.bf16.msra.mxu0 %v2765_v51  ;;  %v4540_v51 = vld [vmem:[%s6152_s6 + $0x78] sm:$0xff]  }
 0x31d   : > { %3086 = vmatprep.subr.bf16.mxu0 %v6180_v17 }
 0x31e   : > { %2977 = vmatpush2.bf16.msra.mxu1 %v2946_v34  ;;  %v4583_v34 = vld [vmem:[%s6152_s6 + $0x188] sm:$0xff]  }
 0x31f   : > { %4034 = vmatmul.mubr.msk.bf16.vlgmr.msra.gmra.mxu0 %vm2778_vm2, %v4534_v29  ;;  %2978 = vmatprep.subr.bf16.mxu1 %v6180_v17  ;;  %v4568_v29 = vld [vmem:[%s6152_s6 + $0xf8] sm:$0xff]   ;;  %v3474_v32 = vand.u32 %v4583_v34, %v5907_v37 }
 0x320   : > { %3087 = vmatpush1.bf16.msra.mxu0 %v4536_v19  ;;  %v4571_v19 = vld [vmem:[%s6152_s6 + $0xe8] sm:$0xff]  }
 0x321   : > { %3088 = vmatprep.subr.bf16.mxu0 %v6180_v17  ;;  %v3214_v5 = vand.u32 %v4571_v19, %v5907_v37 }
 0x322   : > { %2979 = vmatpush2.bf16.msra.mxu1 %v4553_v50  ;;  %v4585_v50 = vld [vmem:[%s6154_s8 + $0x38] ss:$0 sps:$4 sm:$0xff]  }
 0x323   : > { %3216 = vmatprep.subr.bf16.mxu1 %v6180_v17 }
 0x324   : > { %3089 = vmatpush1.bf16.msra.mxu0 %v4538_v8  ;;  %v4572_v8 = vld [vmem:[%s6152_s6 + $0x138] sm:$0xff]  }
 0x325   : > { %3090 = vmatprep.subr.bf16.mxu0 %v6180_v17 }
 0x328   : > { %3091 = vmatpush1.bf16.msra.mxu0 %v4540_v51  ;;  %v3344_v51 = vand.u32 %v4572_v8, %v5907_v37  ;;  %v3591_v37 = vsel %vm1334_vm6, %v4585_v50, 0  ;;  %vm4659_vm6 = vmmov 0  }
 0x329   : > { %3092 = vmatprep.subr.bf16.mxu0 %v6180_v17 }
 0x32c   : > { %3093 = vmatpush1.bf16.msra.mxu0 %v4542_v13  ;;  %v4574_v13 = vld [vmem:[%s6152_s6 + $0x130] sm:$0xff]  }
 0x32d   : > { %3094 = vmatprep.subr.bf16.mxu0 %v6180_v17 }
 0x330   : > { %3095 = vmatpush1.bf16.msra.mxu0 %v4544_v55 }
 0x331   : > { %3096 = vmatprep.subr.bf16.mxu0 %v6180_v17 }
 0x334   : > { %3097 = vmatpush1.bf16.msra.mxu0 %v4546_v54 }
 0x335   : > { %3098 = vmatprep.subr.bf16.mxu0 %v6180_v17 }
 0x338   : > { %3099 = vmatpush1.bf16.msra.mxu0 %v4548_v47  ;;  %v4577_v47 = vld [vmem:[%s6152_s6 + $0x168] sm:$0xff]  }
 0x339   : > { %3100 = vmatprep.subr.bf16.mxu0 %v6180_v17 }
 0x33c   : > { %3101 = vmatpush1.bf16.msra.mxu0 %v4550_v24  ;;  %v4579_v24 = vld [vmem:[%s6152_s6 + $0x158] sm:$0xff]  }
 0x33d   : > { %3114 = vmatprep.subr.bf16.mxu0 %v6180_v17 }
 0x340   : > { %3115 = vmatpush2.bf16.msra.mxu0 %v3084_v57  ;;  %v4584_v57 = vld [vmem:[%s6152_s6 + $0x180] sm:$0xff]  }
 0x341   : > { %3116 = vmatprep.subr.bf16.mxu0 %v6180_v17 }
 0x344   : > { %3117 = vmatpush2.bf16.msra.mxu0 %v4554_v42  ;;  %v4658_v42 = vmov 0.0  }
 0x345   : > { %3346 = vmatprep.subr.bf16.mxu0 %v6180_v17 }
 0x3df   : > { %v2825_v0 = vpop.f32.mrf.mxu0 }
 0x3e1   : > { %v2827_v62 = vpop.f32.mrf.mxu0 }
 0x3e2   : > { %v4306_v53 = vpack.i.bf16 %v2827_v62, %v2825_v0 }
 0x3e3   : > { %v2829_v22 = vpop.f32.mrf.mxu0 }
 0x3e4   : > { %4307 = vrot.lane.b32.xlu0 %v4306_v53, %s4657_s15  ;;  %v4588_v53 = vld [vmem:[%s6154_s8 + $0x20] sm:$0xff]  }
 0x3e5   : > { %v2831_v1 = vpop.f32.mrf.mxu0 }
 0x3e6   : > { %v4311_v31 = vpack.i.bf16 %v2831_v1, %v2829_v22 }
 0x3e8   : > { %4312 = vrot.lane.b32.xlu1 %v4311_v31, %s4657_s15  ;;  %v4591_v31 = vld [vmem:[%s6154_s8 + $0x8] sm:$0xff]  }
 0x456   : > { %v4308_v35 = vpop.permute.xlu0 %4307 }
 0x457   : > { %v4310_v9 = vunpack.i.h.bf16 %v4308_v35  ;;  %v4309_v21 = vunpack.i.l.bf16 %v4308_v35  ;;  %v4592_v35 = vld [vmem:[%s6154_s8] sm:$0xff]  }
 0x459   : > { %v2846_v14 = vsel %vm1245_vm7, %v4309_v21, %v4310_v9  ;;  %v2853_v7 = vmax.f32 %v2827_v62, %v4310_v9  ;;  %v4586_v62 = vld [vmem:[%s6154_s8 + $0x30] sm:$0xff]   ;;  %v4046_v9 = vld [vmem:[%s6153_s7] ss:$0 sm:$0xff] }
 0x45a   : > { %v4313_v16 = vpop.permute.xlu1 %4312  ;;  %v2852_v26 = vmax.f32 %v2825_v0, %v2846_v14 }
 0x45b   : > { %v4315_v39 = vunpack.i.h.bf16 %v4313_v16  ;;  %v4314_v10 = vunpack.i.l.bf16 %v4313_v16 }
 0x45d   : > { %v2855_v23 = vmax.f32 %v2831_v1, %v4315_v39  ;;  %v2847_v60 = vsel %vm1245_vm7, %v4314_v10, %v4315_v39  ;;  %v4590_v1 = vld [vmem:[%s6154_s8 + $0x10] sm:$0xff]   ;;  %vm3586_vm7 = vcmask 982016  }
 0x45e   : > { %v2854_v30 = vmax.f32 %v2829_v22, %v2847_v60  ;;  %v4589_v22 = vld [vmem:[%s6154_s8 + $0x18] sm:$0xff]  }
 0x45f   : > { %v5929_v12 = vpack.c.bf16 %v2855_v23, %v2853_v7 }
 0x460   : > { %v5934_v61 = vpack.c.bf16 %v2854_v30, %v2852_v26 }
 0x461   : > { %4045 = vmatprep.mubr.msk.bf16.mxu1 %vm2938_vm4, %v5929_v12  ;;  %v3019_v28 = vrot.slane %v5929_v12, 1  ;;  %v3149_v63 = vrot.slane %v5929_v12, 2  ;;  %v3279_v45 = vrot.slane %v5929_v12, 3  ;;  %v3409_v33 = vrot.slane %v5929_v12, 4 }
 0x462   : > { %2981 = vmatmul.mubr.bf16.vlgmr.msra.gmra.mxu1 %v5934_v61  ;;  %v3018_v4 = vrot.slane %v5934_v61, 1  ;;  %v3148_v55 = vrot.slane %v5934_v61, 2  ;;  %v3278_v54 = vrot.slane %v5934_v61, 3  ;;  %v3408_v0 = vrot.slane %v5934_v61, 4 }
 0x463   : > { %3217 = vmatpush1.bf16.msra.mxu1 %v4555_v15  ;;  %4077 = vmatprep.mubr.msk.bf16.mxu0 %vm2938_vm4, %v3019_v28 }
 0x464   : > { %4108 = vmatprep.mubr.msk.bf16.mxu1 %vm2938_vm4, %v3149_v63  ;;  %3119 = vmatmul.mubr.bf16.vlgmr.msra.gmra.mxu0 %v3018_v4 }
 0x465   : > { %3347 = vmatpush1.bf16.msra.mxu0 %v4556_v27  ;;  %3218 = vmatprep.subr.bf16.mxu1 %v6180_v17 }
 0x466   : > { %4139 = vmatprep.mubr.msk.bf16.mxu0 %vm2938_vm4, %v3279_v45  ;;  %3348 = vmatprep.subr.bf16.mxu0 %v6180_v17 }
 0x467   : > { %3219 = vmatpush1.bf16.msra.mxu1 %v4557_v11 }
 0x468   : > { %3220 = vmatprep.subr.bf16.mxu1 %v6180_v17 }
 0x469   : > { %3349 = vmatpush1.bf16.msra.mxu0 %v4558_v6 }
 0x46a   : > { %3350 = vmatprep.subr.bf16.mxu0 %v6180_v17 }
 0x46b   : > { %3221 = vmatpush1.bf16.msra.mxu1 %v4559_v44 }
 0x46c   : > { %3222 = vmatprep.subr.bf16.mxu1 %v6180_v17 }
 0x46d   : > { %3351 = vmatpush1.bf16.msra.mxu0 %v4560_v2 }
 0x46e   : > { %3352 = vmatprep.subr.bf16.mxu0 %v6180_v17 }
 0x46f   : > { %3223 = vmatpush1.bf16.msra.mxu1 %v4561_v49 }
 0x470   : > { %3224 = vmatprep.subr.bf16.mxu1 %v6180_v17 }
 0x471   : > { %3353 = vmatpush1.bf16.msra.mxu0 %v4562_v18 }
 0x472   : > { %3354 = vmatprep.subr.bf16.mxu0 %v6180_v17 }
 0x473   : > { %3225 = vmatpush1.bf16.msra.mxu1 %v4563_v38 }
 0x474   : > { %3226 = vmatprep.subr.bf16.mxu1 %v6180_v17 }
 0x475   : > { %3355 = vmatpush1.bf16.msra.mxu0 %v4564_v52 }
 0x476   : > { %3356 = vmatprep.subr.bf16.mxu0 %v6180_v17 }
 0x477   : > { %3227 = vmatpush1.bf16.msra.mxu1 %v4565_v48 }
 0x478   : > { %3228 = vmatprep.subr.bf16.mxu1 %v6180_v17 }
 0x479   : > { %3357 = vmatpush1.bf16.msra.mxu0 %v4566_v43  ;;  %v4171_v43 = vld [vmem:[%s6155_s9] ss:$0 sm:$0xff] }
 0x47a   : > { %3358 = vmatprep.subr.bf16.mxu0 %v6180_v17 }
 0x47b   : > { %3229 = vmatpush1.bf16.msra.mxu1 %v4567_v59 }
 0x47c   : > { %3230 = vmatprep.subr.bf16.mxu1 %v6180_v17 }
 0x47d   : > { %3359 = vmatpush1.bf16.msra.mxu0 %v4568_v29 }
 0x47e   : > { %3360 = vmatprep.subr.bf16.mxu0 %v6180_v17 }
 0x47f   : > { %3231 = vmatpush1.bf16.msra.mxu1 %v4569_v46 }
 0x480   : > { %3244 = vmatprep.subr.bf16.mxu1 %v6180_v17 }
 0x481   : > { %3361 = vmatpush1.bf16.msra.mxu0 %v4570_v25 }
 0x482   : > { %3374 = vmatprep.subr.bf16.mxu0 %v6180_v17 }
 0x483   : > { %3245 = vmatpush2.bf16.msra.mxu1 %v3214_v5 }
 0x484   : > { %3246 = vmatprep.subr.bf16.mxu1 %v6180_v17 }
 0x485   : > { %3375 = vmatpush2.bf16.msra.mxu0 %v3344_v51 }
 0x486   : > { %3376 = vmatprep.subr.bf16.mxu0 %v6180_v17 }
 0x487   : > { %3247 = vmatpush2.bf16.msra.mxu1 %v4573_v36 }
 0x488   : > { %3476 = vmatprep.subr.bf16.mxu1 %v6180_v17 }
 0x489   : > { %3377 = vmatpush2.bf16.msra.mxu0 %v4574_v13 }
 0x48a   : > { %3249 = vmatmul.mubr.bf16.vlgmr.msra.gmra.mxu1 %v3148_v55  ;;  %4202 = vmatprep.subr.bf16.mxu0 %v4658_v42 }
 0x48b   : > { %3477 = vmatpush1.bf16.msra.mxu1 %v4575_v3  ;;  %4170 = vmatprep.mubr.msk.bf16.mxu1 %vm2938_vm4, %v3409_v33 }
 0x48c   : > { %3379 = vmatmul.mubr.bf16.vlgmr.msra.gmra.mxu0 %v3278_v54  ;;  %3478 = vmatprep.subr.bf16.mxu1 %v6180_v17 }
 0x48d   : > { %4203 = vmatpush3.bf16.msra.mxu0 %v3591_v37  ;;  %4218 = vmatprep.mubr.msk.bf16.mxu0 %vm4659_vm6, %v4658_v42 }
 0x48e   : > { %4204 = vmatprep.subr.bf16.mxu0 %v4658_v42 }
 0x48f   : > { %3479 = vmatpush1.bf16.msra.mxu1 %v4576_v20 }
 0x490   : > { %3480 = vmatprep.subr.bf16.mxu1 %v6180_v17 }
 0x491   : > { %4205 = vmatpush3.bf16.msra.mxu0 %v4586_v62 }
 0x492   : > { %4206 = vmatprep.subr.bf16.mxu0 %v4658_v42 }
 0x493   : > { %3481 = vmatpush1.bf16.msra.mxu1 %v4577_v47 }
 0x494   : > { %3482 = vmatprep.subr.bf16.mxu1 %v6180_v17 }
 0x497   : > { %3483 = vmatpush1.bf16.msra.mxu1 %v4578_v40 }
 0x498   : > { %3484 = vmatprep.subr.bf16.mxu1 %v6180_v17 }
 0x49b   : > { %3485 = vmatpush1.bf16.msra.mxu1 %v4579_v24 }
 0x49c   : > { %3486 = vmatprep.subr.bf16.mxu1 %v6180_v17 }
 0x49f   : > { %3487 = vmatpush1.bf16.msra.mxu1 %v4580_v58 }
 0x4a0   : > { %3488 = vmatprep.subr.bf16.mxu1 %v6180_v17 }
 0x4a3   : > { %3489 = vmatpush1.bf16.msra.mxu1 %v4581_v41 }
 0x4a4   : > { %3490 = vmatprep.subr.bf16.mxu1 %v6180_v17 }
 0x4a7   : > { %3491 = vmatpush1.bf16.msra.mxu1 %v4582_v56 }
 0x4a8   : > { %3504 = vmatprep.subr.bf16.mxu1 %v6180_v17 }
 0x4ab   : > { %3505 = vmatpush2.bf16.msra.mxu1 %v3474_v32 }
 0x4ac   : > { %3506 = vmatprep.subr.bf16.mxu1 %v6180_v17  ;;  %v4587_v17 = vld [vmem:[%s6154_s8 + $0x28] sm:$0xff]  }
 0x4ad   : > { %4207 = vmatpush3.bf16.msra.mxu0 %v4587_v17 }
 0x4ae   : > { %4208 = vmatprep.subr.bf16.mxu0 %v4658_v42 }
 0x4af   : > { %3507 = vmatpush2.bf16.msra.mxu1 %v4584_v57 }
 0x4b1   : > { %4209 = vmatpush3.bf16.msra.mxu0 %v4588_v53 }
 0x4b2   : > { %3509 = vmatmul.mubr.bf16.vlgmr.msra.gmra.mxu1 %v3408_v0  ;;  %4210 = vmatprep.subr.bf16.mxu0 %v4658_v42 }
 0x4b5   : > { %4211 = vmatpush3.bf16.msra.mxu0 %v4589_v22 }
 0x4b6   : > { %4212 = vmatprep.subr.bf16.mxu0 %v4658_v42 }
 0x4b9   : > { %4213 = vmatpush3.bf16.msra.mxu0 %v4590_v1 }
 0x4ba   : > { %4214 = vmatprep.subr.bf16.mxu0 %v4658_v42 }
 0x4bd   : > { %4215 = vmatpush3.bf16.msra.mxu0 %v4591_v31 }
 0x4be   : > { %4216 = vmatprep.subr.bf16.mxu0 %v4658_v42 }
 0x4c1   : > { %4217 = vmatpush3.bf16.msra.mxu0 %v4592_v35 }
 0x522   : > { %v2982_v21 = vpop.f32.mrf.mxu1 }
 0x523   : > { %v2994_v16 = vadd.f32 %v4046_v9, %v2982_v21 }
 0x524   : > { %v2984_v14 = vpop.f32.mrf.mxu1  ;;  %v3120_v39 = vpop.f32.mrf.mxu0 }
 0x525   : > { %v3126_v10 = vadd.f32 %v3120_v39, %v2994_v16 }
 0x526   : > { %v2985_v7 = vpop.f32.mrf.mxu1  ;;  %v3122_v23 = vpop.f32.mrf.mxu0 }
 0x528   : > { %v2986_v60 = vpop.f32.mrf.mxu1  ;;  %v3123_v26 = vpop.f32.mrf.mxu0 }
 0x52a   : > { %v3124_v30 = vpop.f32.mrf.mxu0 }
 0x54a   : > { %v3250_v12 = vpop.f32.mrf.mxu1 }
 0x54b   : > { %v3256_v45 = vadd.f32 %v3250_v12, %v3126_v10 }
 0x54c   : > { %v3252_v15 = vpop.f32.mrf.mxu1  ;;  %v3380_v61 = vpop.f32.mrf.mxu0 }
 0x54d   : > { %v3386_v6 = vadd.f32 %v3380_v61, %v3256_v45 }
 0x54e   : > { %v3253_v28 = vpop.f32.mrf.mxu1  ;;  %v3382_v63 = vpop.f32.mrf.mxu0 }
 0x550   : > { %v3254_v27 = vpop.f32.mrf.mxu1  ;;  %v3383_v4 = vpop.f32.mrf.mxu0 }
 0x552   : > { %v3384_v11 = vpop.f32.mrf.mxu0 }
 0x572   : > { %v3510_v44 = vpop.f32.mrf.mxu1 }
 0x573   : > { %v3516_v2 = vadd.f32 %v3510_v44, %v3386_v6 }
 0x574   : > { %v3512_v49 = vpop.f32.mrf.mxu1 }
 0x575   : > { %v3517_v18 = vmax.f32 %v3516_v2, 0.0 }
 0x576   : > { %v3513_v38 = vpop.f32.mrf.mxu1 }
 0x577   : > { %v3518_v52 = vpack.c.bf16 %v3517_v18, %v3517_v18 }
 0x578   : > { %v3514_v48 = vpop.f32.mrf.mxu1 }
 0x579   : > { %4219 = vmatmul.mubr.msk.bf16.vlgmr.msra.gmra.mxu0 %vm3586_vm7, %v3518_v52 }
 0x639   : > { %v3627_v59 = vpop.f32.mrf.mxu0 }
 0x63a   : > { %v3628_v29 = vadd.f32 %v4171_v43, %v3627_v59 }
 0x63b   : > { %v4220_v46 = vpop.f32.mrf.mxu0 }
 0x63c   : > { %v3633_v19 = vmax.f32 %v3628_v29, 0.0 }
 0x63d   : > { %v3630_v25 = vpop.f32.mrf.mxu0 }
 0x63e   : > { %3634 = vst [vmem:[%s353_s22] sm:$0x3] %v3633_v19 }
 0x63f   : > { %v4221_v8 = vpop.f32.mrf.mxu0 }
 0x640   : > { %4606 = shalt.err (!%p4603_p3)
}
 0x641   : > { %s4607_s15 = scalar_lea.hbm %s6105_s26, 32  ;;  %s4611_s20 = scalar_lea.hbm %s6156_s10, 64 }
 0x642   : > { %p4608_p4 = scmp.ne.s32.totalorder %s6105_s26, %s4607_s15  ;;  %p4612_p9 = scmp.lt.s32.totalorder %s6105_s26, %s6156_s10 }
 0x643   : > { %p4613_p10 = scmp.lt.s32.totalorder %s4611_s20, %s4607_s15 }
 0x644   : > { %p4609_p7 = pnand %p4608_p4, %p4754_p5 }
 0x645   : > { %p4614_p11 = por %p4613_p10, %p4612_p9 }
 0x646   : > { %p4610_p8 = pneg %p4609_p7 }
 0x648   : > { %p4615_p12 = pnand %p4614_p11, %p4610_p8 }
 0x64a   : > { %4618 = shalt.err (!%p4615_p12)
}
 0x64b   : > { %4222 = dma.vmem_to_hbm [thread:$0]  (%p4754_p5), %s6107_s27, 32, %s6105_s26, %s3636_s28  }
 0x64c PF: > { %p4228_p13 = scmp.ge.s32.totalorder %s4653_s16, 2  ;;  %s3661_s21 = sand.u32 1, %s4641_s13  }
 0x64d   : > { %s3662_s17 = scalar_lea.sflag [#allocation4], %s3661_s21 }
 0x64e   : > { %p4225_p0 = pnand %p4228_p13, %p4758_p6 }
 0x650   : > { %p4226_p1 = pneg %p4225_p0 }
 0x652   : > { %4636 = dma.done.wait (%p4226_p1), %s3662_s17, 32  }
 0x653   : > { %4638 = vsyncadd (%p4226_p1), %s3662_s17, 4294967264  ;;  %s6185_s29 = sld [smem:[#allocation6_spill]]  ;;  %p20_p2 = scmp.ge.s32.totalorder %s4741_s19, 4  }
 0x654   : > { %s6186_s15 = sld [smem:[#allocation7_spill]]  ;;  %s6187_s13 = smov %s4645_s14 }
 0x655   : > { %s6189_s16 = smov %s4741_s19  ;;  %22 = sbr.rel (!%p20_p2) target bundleno = 3 (0x3), region = 107 }
 0x659   : > { %s6188_s14 = smov %s6185_s29 }
 0x65a   :  { %3667 = vsyncpa [#allocation4], 1 }
 0x65b   :  { %3669 = vsyncpa [#allocation4 + $0x1], 1 }

</bundles_post_ra>
